<compile_context>
chip_gen: v7x
topology: tpu7x:2x2x1
jax: 0.10.0
libtpu: 0.0.40
codegen_flags: <defaults>
</compile_context>

<pallas_src>
import jax
import jax.numpy as jnp
from jax import lax
from jax.experimental import pallas as pl
from jax.experimental.pallas import tpu as pltpu


# ---------------------------------------------------------------------------
# Fused kernel body:  f = sigmoid(alpha) * (A @ (A @ x)) - x
# ---------------------------------------------------------------------------
def _odefunc1_kernel(alph_ref, g_ref, x_ref, f_ref):
    # alph_ref: (1,)    f32,          SMEM  -- precomputed sigmoid(alpha_train)
    # g_ref   : (N, N)  compute dtype VMEM  -- dense adjacency, constant block
    # x_ref   : (N, BD) f32,          VMEM  -- node-feature column block
    # f_ref   : (N, BD) f32                 -- output column block
    x = x_ref[...]
    g = g_ref[...]

    # Two MXU matmuls, f32 accumulation; A@x never leaves VMEM/vregs.
    # Inputs are cast to the adjacency compute dtype (bf16 by default); the
    # epilogue below stays in f32 and uses the exact (un-rounded) x.
    ax = jnp.dot(g, x.astype(g.dtype), preferred_element_type=jnp.float32)
    aax = jnp.dot(g, ax.astype(g.dtype), preferred_element_type=jnp.float32)

    alph = alph_ref[0]                       # scalar splat from SMEM
    f_ref[...] = (alph * aax - x).astype(f_ref.dtype)


def _pick_block_d(d_pad, block_d):
    """Largest multiple of 128 dividing d_pad (<= block_d), preferring >= 2
    grid steps when d_pad >= 256 so the parallel axis can use both v7x cores."""
    cands = [b for b in range(128, d_pad + 1, 128) if d_pad % b == 0 and b <= block_d]
    if not cands:
        return d_pad
    bd = max(cands)
    if d_pad // bd < 2:
        splittable = [b for b in cands if d_pad // b >= 2]
        if splittable:
            bd = max(splittable)
    return bd


def ode_func1_forward(t, x, g, alpha_train, *, block_d=512,
                      compute_dtype=jnp.bfloat16):
    """Mirrors ODEFunc1.forward(t, x) as a single fused pallas_call."""
    del t  # ODE function is autonomous: t is unused (as in the PyTorch module)
    n, d = x.shape
    assert g.shape == (n, n)
    x = x.astype(jnp.float32)

    # Lane-dense layout: pad the latent dim up to a multiple of 128 so stores
    # are full-lane vst, then slice the padding back off at the end.
    d_pad = ((d + 127) // 128) * 128
    x_p = x if d_pad == d else jnp.pad(x, ((0, 0), (0, d_pad - d)))

    bd = _pick_block_d(d_pad, block_d)
    grid = (d_pad // bd,)

    # bf16 adjacency: halves the dominant N^2 HBM stream and its VMEM
    # footprint on v6e/v7x (f32 accumulation is kept inside the kernel).
    g_c = g.astype(compute_dtype)

    # Numerically stable sigmoid, computed once per call (not per block).
    alph = jax.nn.sigmoid(jnp.asarray(alpha_train, jnp.float32).reshape(-1)[:1])

    csize = jnp.dtype(compute_dtype).itemsize
    # Adjacency (single-buffered) + double-buffered x/out column blocks, with
    # headroom; floor raises v5e's 16 MiB default, cap respects v7x's 64 MiB.
    need = n * n * csize + 2 * 2 * n * bd * 4
    vmem_limit = int(min(64 * 1024 * 1024, max(32 * 1024 * 1024, need * 2)))

    cost = pl.CostEstimate(
        flops=4 * n * n * d_pad,                               # two N x N x D matmuls
        bytes_accessed=n * n * csize + 2 * n * d_pad * 4,      # g + x + out
        transcendentals=0,
    )

    def build(adj_spec):
        return pl.pallas_call(
            _odefunc1_kernel,
            out_shape=jax.ShapeDtypeStruct((n, d_pad), x.dtype),
            grid_spec=pltpu.PrefetchScalarGridSpec(
                num_scalar_prefetch=0,
                grid=grid,  # independent latent-dim column blocks
                in_specs=[
                    pl.BlockSpec(memory_space=pltpu.MemorySpace.SMEM),  # sigmoid(alpha)
                    adj_spec,                                           # adjacency (resident)
                    pl.BlockSpec((n, bd), lambda j: (0, j)),            # x column block
                ],
                out_specs=pl.BlockSpec((n, bd), lambda j: (0, j)),
            ),
            compiler_params=pltpu.CompilerParams(
                dimension_semantics=("parallel",),  # shard blocks across v7x's 2 TCs
                vmem_limit_bytes=vmem_limit,
            ),
            cost_estimate=cost,
        )

    try:
        # Constant block index -> double-buffering the adjacency is pure VMEM
        # waste; request a single pipeline buffer for it (key on v7x, 64 MiB).
        adj_spec = pl.BlockSpec((n, n), lambda j: (0, 0),
                                pipeline_mode=pl.Buffered(1))
        out = build(adj_spec)(alph, g_c, x_p)
    except Exception:
        # Fallback for JAX versions that reject single-buffered pipeline mode.
        adj_spec = pl.BlockSpec((n, n), lambda j: (0, 0))
        out = build(adj_spec)(alph, g_c, x_p)

    return out if d_pad == d else out[:, :d]


# ---------------------------------------------------------------------------
# Pure-JAX reference for correctness check
# ---------------------------------------------------------------------------
def _ode_func1_ref(t, x, g, alpha_train):
    del t
    alph = jax.nn.sigmoid(alpha_train[0])
    ax = jnp.dot(g, x, precision=lax.Precision.HIGHEST)
    ax = alph * jnp.dot(g, ax, precision=lax.Precision.HIGHEST)
    return ax - x


# ---------------------------------------------------------------------------
if __name__ == "__main__":
    key = jax.random.PRNGKey(0)
    k_adj, k_x = jax.random.split(key)

    # Small graph consistent with the module: N nodes, lane-dense latent dim.
    num_nodes, latent_dim = 256, 256

    # Deterministic dense "adjacency": sparse random graph + self loops,
    # row-normalized (stands in for the sparse `adj` the module is built with).
    a = (jax.random.uniform(k_adj, (num_nodes, num_nodes)) < 0.1).astype(jnp.float32)
    a = jnp.maximum(a, a.T) + jnp.eye(num_nodes, dtype=jnp.float32)
    g = a / jnp.sum(a, axis=1, keepdims=True)

    x = jax.random.normal(k_x, (num_nodes, latent_dim), dtype=jnp.float32)
    alpha_train = jnp.full((1,), 0.9, dtype=jnp.float32)  # nn.Parameter(0.9 * ones(1))
    t = jnp.float32(0.0)

    # --- default (bf16 MXU) path, D a multiple of 128 --------------------
    ref = jax.block_until_ready(_ode_func1_ref(t, x, g, alpha_train))
    out = jax.block_until_ready(ode_func1_forward(t, x, g, alpha_train))
    assert out.shape == x.shape and out.dtype == x.dtype
    assert jnp.allclose(out, ref, rtol=2e-2, atol=2e-2), \
        "Pallas ODEFunc1 (bf16 MXU path) mismatch vs JAX reference"

    # --- f32 path, D not a multiple of 128 (exercises the padding branch) -
    d2 = 192
    x2 = x[:, :d2]
    ref2 = jax.block_until_ready(_ode_func1_ref(t, x2, g, alpha_train))
    out2 = jax.block_until_ready(
        ode_func1_forward(t, x2, g, alpha_train, compute_dtype=jnp.float32))
    assert out2.shape == x2.shape and out2.dtype == x2.dtype
    assert jnp.allclose(out2, ref2, rtol=1e-3, atol=1e-3), \
        "Pallas ODEFunc1 (f32 path) mismatch vs JAX reference"

    print("KERNEL_OK")
</pallas_src>

<mosaic_0001>
module attributes {stable_mosaic.version = 11 : i64} {
  func.func @_odefunc1_kernel(%arg0: i32, %arg1: memref<1xf32, #tpu.memory_space<smem>>, %arg2: memref<256x256xbf16, #tpu.memory_space<vmem>>, %arg3: memref<256x128xf32, #tpu.memory_space<vmem>>, %arg4: memref<256x128xf32, #tpu.memory_space<vmem>>) attributes {dimension_semantics = [#tpu.dimension_semantics<parallel>], iteration_bounds = array<i64: 2>, scalar_prefetch = 0 : i64, scratch_operands = 0 : i64, tpu.core_type = #tpu.core_type<tc>, window_params = [{transform_indices = @transform_0, window_bounds = array<i64: 1>}, {pipeline_mode = #tpu.pipeline_mode<synchronous>, transform_indices = @transform_1, window_bounds = array<i64: 256, 256>}, {transform_indices = @transform_2, window_bounds = array<i64: 256, 128>}, {transform_indices = @transform_3, window_bounds = array<i64: 256, 128>}]} {
    %c0 = arith.constant 0 : index
    %c0_0 = arith.constant 0 : index
    %0 = vector.load %arg3[%c0, %c0_0] : memref<256x128xf32, #tpu.memory_space<vmem>>, vector<256x128xf32>
    %c0_1 = arith.constant 0 : index
    %c0_2 = arith.constant 0 : index
    %1 = vector.load %arg2[%c0_1, %c0_2] : memref<256x256xbf16, #tpu.memory_space<vmem>>, vector<256x256xbf16>
    %2 = arith.truncf %0 : vector<256x128xf32> to vector<256x128xbf16>
    %cst = arith.constant dense<0.000000e+00> : vector<256x128xf32>
    %3 = tpu.matmul %1, %2, %cst {dimension_numbers = #tpu.dot_dimension_numbers<[1], [0], [0], [1], [0, 0, 1, 1], [], []>} : vector<256x256xbf16>, vector<256x128xbf16>, vector<256x128xf32> -> vector<256x128xf32>
    %4 = arith.truncf %3 : vector<256x128xf32> to vector<256x128xbf16>
    %cst_3 = arith.constant dense<0.000000e+00> : vector<256x128xf32>
    %5 = tpu.matmul %1, %4, %cst_3 {dimension_numbers = #tpu.dot_dimension_numbers<[1], [0], [0], [1], [0, 0, 1, 1], [], []>} : vector<256x256xbf16>, vector<256x128xbf16>, vector<256x128xf32> -> vector<256x128xf32>
    %c0_4 = arith.constant 0 : index
    %6 = memref.load %arg1[%c0_4] : memref<1xf32, #tpu.memory_space<smem>>
    %7 = vector.broadcast %6 : f32 to vector<256x128xf32>
    %8 = arith.mulf %7, %5 : vector<256x128xf32>
    %9 = arith.subf %8, %0 : vector<256x128xf32>
    %c0_5 = arith.constant 0 : index
    %c0_6 = arith.constant 0 : index
    %10 = vector.load %arg4[%c0_5, %c0_6] : memref<256x128xf32, #tpu.memory_space<vmem>>, vector<256x128xf32>
    tpu.vector_store %arg4[%c0_5, %c0_6], %9 {strides = array<i32>} : memref<256x128xf32, #tpu.memory_space<vmem>>, vector<256x128xf32>,
    return
  }
  func.func @transform_0(%arg0: i32) -> i32 {
    %c0_i32 = arith.constant 0 : i32
    %c0_i32_0 = arith.constant 0 : i32
    return %c0_i32 : i32
  }
  func.func @transform_1(%arg0: i32) -> (i32, i32) {
    %c0_i32 = arith.constant 0 : i32
    %c0_i32_0 = arith.constant 0 : i32
    %c0_i32_1 = arith.constant 0 : i32
    return %c0_i32, %c0_i32_0 : i32, i32
  }
  func.func @transform_2(%arg0: i32) -> (i32, i32) {
    %c0_i32 = arith.constant 0 : i32
    %c0_i32_0 = arith.constant 0 : i32
    return %c0_i32, %arg0 : i32, i32
  }
  func.func @transform_3(%arg0: i32) -> (i32, i32) {
    %c0_i32 = arith.constant 0 : i32
    %c0_i32_0 = arith.constant 0 : i32
    return %c0_i32, %arg0 : i32, i32
  }
}

module attributes {stable_mosaic.version = 11 : i64} {
  func.func @_odefunc1_kernel(%arg0: i32, %arg1: memref<1xf32, #tpu.memory_space<smem>>, %arg2: memref<256x256xbf16, #tpu.memory_space<vmem>>, %arg3: memref<256x128xf32, #tpu.memory_space<vmem>>, %arg4: memref<256x128xf32, #tpu.memory_space<vmem>>) attributes {dimension_semantics = [#tpu.dimension_semantics<parallel>], iteration_bounds = array<i64: 2>, scalar_prefetch = 0 : i64, scratch_operands = 0 : i64, tpu.core_type = #tpu.core_type<tc>, window_params = [{transform_indices = @transform_0, window_bounds = array<i64: 1>}, {pipeline_mode = #tpu.pipeline_mode<synchronous>, transform_indices = @transform_1, window_bounds = array<i64: 256, 256>}, {transform_indices = @transform_2, window_bounds = array<i64: 256, 128>}, {transform_indices = @transform_3, window_bounds = array<i64: 256, 128>}]} {
    %c0 = arith.constant 0 : index
    %c0_0 = arith.constant 0 : index
    %0 = vector.load %arg3[%c0, %c0_0] : memref<256x128xf32, #tpu.memory_space<vmem>>, vector<256x128xf32>
    %c0_1 = arith.constant 0 : index
    %c0_2 = arith.constant 0 : index
    %1 = vector.load %arg2[%c0_1, %c0_2] : memref<256x256xbf16, #tpu.memory_space<vmem>>, vector<256x256xbf16>
    %2 = arith.truncf %0 : vector<256x128xf32> to vector<256x128xbf16>
    %cst = arith.constant dense<0.000000e+00> : vector<256x128xf32>
    %3 = tpu.matmul %1, %2, %cst {dimension_numbers = #tpu.dot_dimension_numbers<[1], [0], [0], [1], [0, 0, 1, 1], [], []>} : vector<256x256xbf16>, vector<256x128xbf16>, vector<256x128xf32> -> vector<256x128xf32>
    %4 = arith.truncf %3 : vector<256x128xf32> to vector<256x128xbf16>
    %cst_3 = arith.constant dense<0.000000e+00> : vector<256x128xf32>
    %5 = tpu.matmul %1, %4, %cst_3 {dimension_numbers = #tpu.dot_dimension_numbers<[1], [0], [0], [1], [0, 0, 1, 1], [], []>} : vector<256x256xbf16>, vector<256x128xbf16>, vector<256x128xf32> -> vector<256x128xf32>
    %c0_4 = arith.constant 0 : index
    %6 = memref.load %arg1[%c0_4] : memref<1xf32, #tpu.memory_space<smem>>
    %7 = vector.broadcast %6 : f32 to vector<256x128xf32>
    %8 = arith.mulf %7, %5 : vector<256x128xf32>
    %9 = arith.subf %8, %0 : vector<256x128xf32>
    %c0_5 = arith.constant 0 : index
    %c0_6 = arith.constant 0 : index
    %10 = vector.load %arg4[%c0_5, %c0_6] : memref<256x128xf32, #tpu.memory_space<vmem>>, vector<256x128xf32>
    tpu.vector_store %arg4[%c0_5, %c0_6], %9 {strides = array<i32>} : memref<256x128xf32, #tpu.memory_space<vmem>>, vector<256x128xf32>,
    return
  }
  func.func @transform_0(%arg0: i32) -> i32 {
    %c0_i32 = arith.constant 0 : i32
    %c0_i32_0 = arith.constant 0 : i32
    return %c0_i32 : i32
  }
  func.func @transform_1(%arg0: i32) -> (i32, i32) {
    %c0_i32 = arith.constant 0 : i32
    %c0_i32_0 = arith.constant 0 : i32
    %c0_i32_1 = arith.constant 0 : i32
    return %c0_i32, %c0_i32_0 : i32, i32
  }
  func.func @transform_2(%arg0: i32) -> (i32, i32) {
    %c0_i32 = arith.constant 0 : i32
    %c0_i32_0 = arith.constant 0 : i32
    return %c0_i32, %arg0 : i32, i32
  }
  func.func @transform_3(%arg0: i32) -> (i32, i32) {
    %c0_i32 = arith.constant 0 : i32
    %c0_i32_0 = arith.constant 0 : i32
    return %c0_i32, %arg0 : i32, i32
  }
}

</mosaic_0001>

<bundles_post_ra>
// kernel: tpu_custom_call.1
= control target key start
LH: loop header
LB: loop body
LE: loop exit
PB: predicated region body
PF: predicated region fallthrough
CT: control target
= control target key end

     0   :  { %s2149_s0 = inlined_call_operand.<no memory space> [shape: f32[1], index: 0, kind: input, shape index: {}]   ;;  %s2150_s1 = inlined_call_operand.hbm [shape: bf16[256,256], index: 1, kind: input, shape index: {}]   ;;  %s2151_s2 = inlined_call_operand.hbm [shape: f32[256,256], index: 2, kind: input, shape index: {}]   ;;  %s2152_s3 = inlined_call_operand.hbm [shape: f32[256,256], index: 3, kind: output, shape index: {}]  }
   0x1   :  { %8 = sst [smem:[#allocation2]] %s2149_s0 }
   0x2   :  { %9 = vsyncpa [#allocation4], 0 }
   0x3   :  { %10 = vsyncpa [#allocation7], 0 }
   0x4   :  { %12 = vsyncpa [#allocation7 + $0x1], 0 }
   0x5   :  { %13 = vsyncpa [#allocation5], 0 }
   0x6   :  { %15 = vsyncpa [#allocation5 + $0x1], 0  ;;  %s1522_s14 = smov 0   ;;  %s1524_s15 = smov 0  }
   0x7   :  { %s1526_s16 = smov 0   ;;  %s1528_s17 = smov 0  }
   0x8 LB: > { %s1543_s0 = sadd.s32 4294967295, %s1488_s17   ;;  %s979_s18 = sadd.s32 4294967294, %s1488_s17   ;;  %s1488_s17 = sphi %s1528_s17, %s2278_s17   ;;  %s1484_s16 = sphi %s1526_s16, %s2277_s16   ;;  %s1480_s15 = sphi %s1524_s15, %s2276_s15   ;;  %s1476_s14 = sphi %s1522_s14, %s2275_s14  }
   0x9   : > { %s1547_s19 = sadd.s32 1, %s1488_s17   ;;  %s70_s20 = sadd.s32 1, %s1484_s16 }
   0xa   : > { %s67_s21 = ssub.s32 %s1488_s17, %s1547_s19  ;;  %p77_p0 = scmp.ne.s32.totalorder %s1484_s16, %s1480_s15 }
   0xb   : > { %p68_p1 = scmp.eq.s32.totalorder %s67_s21, 0  ;;  %p78_p2 = scmp.eq.s32.totalorder %s1488_s17, 0 }
   0xc   : > { %p83_p3 = scmp.ne.s32.totalorder %s1480_s15, %s1476_s14  ;;  %p2153_p4 = scmp.eq.s32.totalorder %s1543_s0, 0 }
   0xd   : > { %s1559_s22 = scalar_select %p68_p1, %s1484_s16, %s70_s20  }
   0xe   : > { %p1561_p5 = por %p78_p2, %p77_p0  ;;  %p1567_p6 = por %p2153_p4, %p83_p3 }
   0xf   : > { %p107_p7 = scmp.eq.s32.totalorder %s1543_s0, 1  ;;  %p113_p8 = scmp.eq.s32.totalorder %s979_s18, 1 }
  0x10   : > { %s2189_s23 = scalar_select %p1561_p5, 1, 0 }
  0x11   : > { %s2190_s24 = scalar_select %p1567_p6, 1, 0 }
  0x12   : > { %p980_p9 = scmp.ge.s32.totalorder %s1488_s17, 1  ;;  %p120_p10 = scmp.lt.s32.totalorder %s1488_s17, 3 }
  0x13   : > { %p1574_p11 = por %p107_p7, %p77_p0  ;;  %p1578_p12 = por %p113_p8, %p83_p3 }
  0x14   : > { %p1582_p13 = pnand %p980_p9, %p120_p10  ;;  %s1490_s28 = smov [#allocation3]  }
  0x15   : > { %s2191_s25 = scalar_select %p1574_p11, 1, 0 }
  0x16   : > { %s2192_s26 = scalar_select %p1578_p12, 1, 0 }
  0x17   : > { %s2193_s27 = scalar_select %p1582_p13, 1, 0 }
  0x18   : > { %p1257_p1 = pneg %p1582_p13  ;;  %s135_s29 = sshll.u32 %s1490_s28, 4  ;;  %s136_s29 = int_to_ptr.vmem [resolvable:$true] %s135_s29 }
  0x19   : > { %s149_s4 = sand.u32 1, %s1484_s16   ;;  %s1360_s7 = scalar_lea.hbm %s2150_s1, 4096 }
  0x1a   : > { %p1590_p2 = pnand %p1257_p1, %p2153_p4  ;;  %p1361_p7 = scmp.ne.s32.totalorder %s2150_s1, %s1360_s7 }
  0x1b   : > { %p1367_p1 = scmp.lt.u32.totalorder %s1360_s7, %s2150_s1 }
  0x1c   : > { %p1362_p8 = pneg %p1590_p2 }
  0x1e   : > { %p1363_p9 = pnand %p1362_p8, %p1361_p7 }
  0x20   : > { %p1364_p10 = pneg %p1363_p9 }
  0x22   : > { %p1369_p4 = pnand %p1367_p1, %p1364_p10 }
  0x24   : > { %1372 = shalt.err (!%p1369_p4)
}
  0x25   : > { %s1373_s12 = scalar_lea.vmem %s136_s29, 4096  ;;  %p1381_p11 = scmp.lt.s32.totalorder %s136_s29, %s136_s29 }
  0x26   : > { %p1374_p0 = scmp.ne.s32.totalorder %s136_s29, %s1373_s12  ;;  %p1382_p6 = scmp.lt.s32.totalorder %s1373_s12, %s1373_s12 }
  0x28   : > { %p1376_p3 = pnand %p1374_p0, %p1362_p8  ;;  %p1383_p13 = por %p1382_p6, %p1381_p11 }
  0x2a   : > { %p1377_p12 = pneg %p1376_p3 }
  0x2c   : > { %p1384_p5 = pnand %p1383_p13, %p1377_p12 }
  0x2e   : > { %1387 = shalt.err (!%p1384_p5)
}
  0x2f   : > { %s1491_s13 = smov 128   ;;  %s1492_s18 = smov 8  }
  0x30   : > { %1260 = dma.hbm_to_vmem [thread:$0]  (!%p1590_p2), %s2150_s1, 4096, %s136_s29, [#allocation4], %s1491_s13, %s1491_s13, %s1492_s18  }
  0x31   : > { %p2195_p4 = scmp.ne.s32.totalorder %s2189_s23, 0  ;;  %p2196_p0 = scmp.lt.s32.totalorder %s1488_s17, 2 }
  0x32   : > { %s983_s5 = sshll.u32 %s149_s4, 8  ;;  %s984_s6 = sshll.u32 %s1488_s17, 7 }
  0x33   : > { %p1620_p3 = pnand %p2196_p0, %p2195_p4  ;;  %s1628_s30 = scalar_lea.hbm %s2151_s2, %s984_s6 }
  0x34   : > { %s153_s29 = scalar_lea.vmem [#allocation6], %s983_s5  ;;  %s1632_s9 = scalar_lea.sflag [#allocation7], %s149_s4 }
  0x35   : > { %s159_s23 = sshll.u32 %s153_s29, 4  ;;  %s1388_s10 = scalar_lea.hbm %s1628_s30, 4096  ;;  %s1630_s23 = int_to_ptr.vmem [resolvable:$true] %s159_s23 }
  0x36   : > { %p1389_p5 = scmp.ne.s32.totalorder %s1628_s30, %s1388_s10  ;;  %p1390_p6 = pneg %p1620_p3 }
  0x37   : > { %s1393_s20 = scalar_lea.hbm %s2151_s2, 8192  ;;  %p1394_p13 = scmp.lt.u32.totalorder %s1628_s30, %s2151_s2 }
  0x38   : > { %p1391_p11 = pnand %p1390_p6, %p1389_p5  ;;  %p1395_p2 = scmp.lt.u32.totalorder %s1393_s20, %s1388_s10 }
  0x39   : > { %p1397_p8 = scmp.lt.u32.totalorder %s1388_s10, %s1628_s30 }
  0x3a   : > { %p1392_p12 = pneg %p1391_p11  ;;  %p1396_p7 = por %p1395_p2, %p1394_p13 }
  0x3c   : > { %p1398_p9 = por %p1397_p8, %p1396_p7 }
  0x3e   : > { %p1399_p10 = pnand %p1398_p9, %p1392_p12 }
  0x40   : > { %1402 = shalt.err (!%p1399_p10)
}
  0x41   : > { %s1403_s4 = scalar_lea.vmem %s1630_s23, 4096  ;;  %s1493_s5 = smov [#allocation6]  }
  0x42   : > { %p1404_p1 = scmp.ne.s32.totalorder %s1630_s23, %s1403_s4  ;;  %s1408_s7 = sshll.u32 %s1493_s5, 4  ;;  %s1409_s7 = int_to_ptr.vmem [resolvable:$false] %s1408_s7 }
  0x43   : > { %s1410_s8 = scalar_lea.vmem %s1409_s7, 8192  ;;  %p1411_p5 = scmp.lt.s32.totalorder %s1630_s23, %s1409_s7 }
  0x44   : > { %p1406_p4 = pnand %p1404_p1, %p1390_p6  ;;  %p1412_p11 = scmp.lt.s32.totalorder %s1410_s8, %s1403_s4 }
  0x46   : > { %p1407_p0 = pneg %p1406_p4  ;;  %p1413_p13 = por %p1412_p11, %p1411_p5 }
  0x48   : > { %p1414_p2 = pnand %p1413_p13, %p1407_p0 }
  0x4a   : > { %1417 = shalt.err (!%p1414_p2)
}
  0x4b   : > { %s1494_s29 = smov 256   ;;  %p2198_p6 = scmp.ne.s32.totalorder %s2193_s27, 0 }
  0x4c   : > { %1264 = dma.hbm_to_vmem [thread:$0]  (!%p1620_p3), %s1628_s30, 4096, %s1630_s23, %s1632_s9, %s1494_s29, %s1491_s13, %s1492_s18  }
  0x4d   : > { %171 = sbr.rel (%p2198_p6) target bundleno = 826 (0x33a), region = 32 }
  0x54   : > { %p2199_p12 = scmp.eq.s32.totalorder %s1543_s0, 0 }
  0x56   : > { %1463 = dma.done.wait (%p2199_p12), [#allocation4], 4096   ;;  %p2200_p7 = pmov %p2199_p12 }
  0x57   : > { %s1669_s10 = sand.u32 1, %s1480_s15   ;;  %p2201_p3 = scmp.ne.s32.totalorder %s2190_s24, 0 }
  0x58   : > { %1465 = vsyncadd (%p2200_p7), [#allocation4], 4294963200  ;;  %s987_s28 = sshll.u32 %s1669_s10, 8  ;;  %s178_s11 = scalar_lea.sflag [#allocation7], %s1669_s10 }
  0x59   : > { %s1675_s13 = scalar_lea.vmem [#allocation6], %s987_s28 }
  0x5a   : > { %1467 = dma.done.wait (%p2201_p3), %s178_s11, 4096  }
  0x5b   : > { %1469 = vsyncadd (%p2201_p3), %s178_s11, 4294963200  ;;  %v1682_v0 = vld [vmem:[%s1675_s13 + $0x80] sm:$0xff]  ;;  %v1685_v1 = vld [vmem:[%s1675_s13 + $0x88] sm:$0xff]  ;;  %s783_s24 = sld [smem:[#allocation2]]  ;;  %s2003_s27 = scalar_lea.vmem [#allocation8], %s987_s28 }
  0x5c   : > { %2202 = vst [vmem:[#allocation12_spill] sm:$0xff] %v1682_v0  ;;  %2203 = vst [vmem:[#allocation13_spill] sm:$0xff] %v1685_v1  ;;  %v1688_v2 = vld [vmem:[%s1675_s13] sm:$0xff]  ;;  %v277_v3 = vpack.c.bf16 %v1685_v1, %v1682_v0  ;;  %v1693_v4 = vld [vmem:[%s1675_s13 + $0x8] sm:$0xff]  ;;  %s1022_s18 = sshll.u32 %s1543_s0, 7  ;;  %s894_s30 = sshll.u32 %s2003_s27, 4  ;;  %s2102_s30 = int_to_ptr.vmem [resolvable:$true] %s894_s30 }
  0x5d   : > { %2204 = vst [vmem:[#allocation14_spill] sm:$0xff] %v1688_v2  ;;  %2205 = vst [vmem:[#allocation15_spill] sm:$0xff] %v1693_v4  ;;  %v1696_v5 = vld [vmem:[%s1675_s13 + $0x90] sm:$0xff]  ;;  %v1699_v6 = vld [vmem:[%s1675_s13 + $0x98] sm:$0xff]  ;;  %v269_v7 = vpack.c.bf16 %v1693_v4, %v1688_v2  ;;  %s2100_s12 = scalar_lea.hbm %s2152_s3, %s1022_s18  ;;  %s882_s0 = scalar_lea.sflag [#allocation5], %s1669_s10 }
  0x5e   : > { %2206 = vst [vmem:[#allocation16_spill] sm:$0xff] %v1696_v5  ;;  %2207 = vst [vmem:[#allocation17_spill] sm:$0xff] %v1699_v6  ;;  %v278_v8 = vpack.c.bf16 %v1699_v6, %v1696_v5  ;;  %v1706_v9 = vld [vmem:[%s1675_s13 + $0x10] sm:$0xff]  ;;  %v1709_v10 = vld [vmem:[%s1675_s13 + $0x18] sm:$0xff]  ;;  %1025 = vmatprep.subr.bf16.mxu0 %v277_v3  ;;  %s1418_s20 = scalar_lea.vmem %s2102_s30, 4096  ;;  %p2272_p9 = scmp.ne.s32.totalorder %s2191_s25, 0 }
  0x5f   : > { %2208 = vst [vmem:[#allocation18_spill] sm:$0xff] %v1706_v9  ;;  %2209 = vst [vmem:[#allocation19_spill] sm:$0xff] %v1709_v10  ;;  %v1712_v11 = vld [vmem:[%s1675_s13 + $0xa0] sm:$0xff]  ;;  %v1715_v12 = vld [vmem:[%s1675_s13 + $0xa8] sm:$0xff]  ;;  %1026 = vmatpush3.bf16.msra.mxu0 %v269_v7  ;;  %v270_v13 = vpack.c.bf16 %v1709_v10, %v1706_v9  ;;  %p1419_p8 = scmp.ne.s32.totalorder %s2102_s30, %s1418_s20  ;;  %s1495_s21 = smov [#allocation8]  }
  0x60   : > { %2210 = vst [vmem:[#allocation20_spill] sm:$0xff] %v1712_v11  ;;  %2211 = vst [vmem:[#allocation21_spill] sm:$0xff] %v1715_v12  ;;  %1027 = vmatprep.subr.bf16.mxu0 %v278_v8  ;;  %v279_v14 = vpack.c.bf16 %v1715_v12, %v1712_v11  ;;  %v1722_v15 = vld [vmem:[%s1675_s13 + $0x20] sm:$0xff]  ;;  %v1725_v16 = vld [vmem:[%s1675_s13 + $0x28] sm:$0xff]  ;;  %s1422_s6 = sshll.u32 %s1495_s21, 4  ;;  %s1423_s6 = int_to_ptr.vmem [resolvable:$false] %s1422_s6 }
  0x61   : > { %2212 = vst [vmem:[#allocation22_spill] sm:$0xff] %v1722_v15  ;;  %2213 = vst [vmem:[#allocation23_spill] sm:$0xff] %v1725_v16  ;;  %v1728_v17 = vld [vmem:[%s1675_s13 + $0xb0] sm:$0xff]  ;;  %v1731_v18 = vld [vmem:[%s1675_s13 + $0xb8] sm:$0xff]  ;;  %v271_v19 = vpack.c.bf16 %v1725_v16, %v1722_v15  ;;  %p1420_p10 = pnand %p1419_p8, %p2272_p9  ;;  %s1424_s4 = scalar_lea.vmem %s1423_s6, 8192 }
  0x62   : > { %2214 = vst [vmem:[#allocation24_spill] sm:$0xff] %v1728_v17  ;;  %2215 = vst [vmem:[#allocation25_spill] sm:$0xff] %v1731_v18  ;;  %v280_v20 = vpack.c.bf16 %v1731_v18, %v1728_v17  ;;  %v1738_v21 = vld [vmem:[%s1675_s13 + $0x30] sm:$0xff]  ;;  %v1741_v22 = vld [vmem:[%s1675_s13 + $0x38] sm:$0xff]  ;;  %p1425_p4 = scmp.lt.s32.totalorder %s2102_s30, %s1423_s6  ;;  %p1426_p0 = scmp.lt.s32.totalorder %s1424_s4, %s1418_s20 }
  0x63   : > { %1028 = vmatpush3.bf16.msra.mxu0 %v270_v13  ;;  %2216 = vst [vmem:[#allocation26_spill] sm:$0xff] %v1738_v21  ;;  %2217 = vst [vmem:[#allocation27_spill] sm:$0xff] %v1741_v22  ;;  %v1744_v23 = vld [vmem:[%s1675_s13 + $0xc0] sm:$0xff]  ;;  %v1747_v24 = vld [vmem:[%s1675_s13 + $0xc8] sm:$0xff]  ;;  %v272_v26 = vpack.c.bf16 %v1741_v22, %v1738_v21  ;;  %p1421_p1 = pneg %p1420_p10 }
  0x64   : > { %1029 = vmatprep.subr.bf16.mxu0 %v279_v14  ;;  %2218 = vst [vmem:[#allocation28_spill] sm:$0xff] %v1744_v23  ;;  %2219 = vst [vmem:[#allocation29_spill] sm:$0xff] %v1747_v24  ;;  %v1314_v25 = vld [vmem:[#allocation3 + $0x4] ss:$8 sps:$4 sm:$0xff]   ;;  %v281_v28 = vpack.c.bf16 %v1747_v24, %v1744_v23  ;;  %v1760_v30 = vld [vmem:[%s1675_s13 + $0xd0] sm:$0xff]  ;;  %p1427_p5 = por %p1426_p0, %p1425_p4 }
  0x65   : > { %v1752_v27 = vld [vmem:[%s1675_s13 + $0x40] sm:$0xff]  ;;  %v1757_v29 = vld [vmem:[%s1675_s13 + $0x48] sm:$0xff]  ;;  %477 = vmatprep.mubr.bf16.mxu0 %v1314_v25  ;;  %2222 = vst [vmem:[#allocation32_spill] sm:$0xff] %v1760_v30  ;;  %v1763_v31 = vld [vmem:[%s1675_s13 + $0xd8] sm:$0xff]  ;;  %654 = vmatprep.mubr.bf16.mxu1 %v1314_v25 }
  0x66   : > { %2220 = vst [vmem:[#allocation30_spill] sm:$0xff] %v1752_v27  ;;  %2221 = vst [vmem:[#allocation31_spill] sm:$0xff] %v1757_v29  ;;  %v273_v32 = vpack.c.bf16 %v1757_v29, %v1752_v27  ;;  %v1768_v33 = vld [vmem:[%s1675_s13 + $0x50] sm:$0xff]  ;;  %v282_v34 = vpack.c.bf16 %v1763_v31, %v1760_v30  ;;  %v1773_v35 = vld [vmem:[%s1675_s13 + $0x58] sm:$0xff]  ;;  %p1428_p11 = pnand %p1427_p5, %p1421_p1 }
  0x67   : > { %1030 = vmatpush3.bf16.msra.mxu0 %v271_v19  ;;  %2223 = vst [vmem:[#allocation33_spill] sm:$0xff] %v1763_v31  ;;  %2224 = vst [vmem:[#allocation34_spill] sm:$0xff] %v1768_v33  ;;  %v1776_v36 = vld [vmem:[%s1675_s13 + $0xe0] sm:$0xff]  ;;  %v1779_v37 = vld [vmem:[%s1675_s13 + $0xe8] sm:$0xff]  ;;  %v274_v38 = vpack.c.bf16 %v1773_v35, %v1768_v33 }
  0x68   : > { %1031 = vmatprep.subr.bf16.mxu0 %v280_v20  ;;  %2225 = vst [vmem:[#allocation35_spill] sm:$0xff] %v1773_v35  ;;  %2226 = vst [vmem:[#allocation36_spill] sm:$0xff] %v1776_v36  ;;  %v1784_v39 = vld [vmem:[%s1675_s13 + $0x60] sm:$0xff]  ;;  %v283_v40 = vpack.c.bf16 %v1779_v37, %v1776_v36  ;;  %v1789_v41 = vld [vmem:[%s1675_s13 + $0x68] sm:$0xff] }
  0x69   : > { %2227 = vst [vmem:[#allocation37_spill] sm:$0xff] %v1779_v37  ;;  %2228 = vst [vmem:[#allocation38_spill] sm:$0xff] %v1784_v39  ;;  %v1792_v42 = vld [vmem:[%s1675_s13 + $0xf0] sm:$0xff]  ;;  %v1795_v43 = vld [vmem:[%s1675_s13 + $0xf8] sm:$0xff]  ;;  %v275_v44 = vpack.c.bf16 %v1789_v41, %v1784_v39 }
  0x6a   : > { %2229 = vst [vmem:[#allocation39_spill] sm:$0xff] %v1789_v41  ;;  %2230 = vst [vmem:[#allocation40_spill] sm:$0xff] %v1792_v42  ;;  %v1800_v45 = vld [vmem:[%s1675_s13 + $0x70] sm:$0xff]  ;;  %v284_v46 = vpack.c.bf16 %v1795_v43, %v1792_v42  ;;  %v1805_v47 = vld [vmem:[%s1675_s13 + $0x78] sm:$0xff] }
  0x6b   : > { %1032 = vmatpush3.bf16.msra.mxu0 %v272_v26  ;;  %2231 = vst [vmem:[#allocation41_spill] sm:$0xff] %v1795_v43  ;;  %2232 = vst [vmem:[#allocation42_spill] sm:$0xff] %v1800_v45  ;;  %v276_v48 = vpack.c.bf16 %v1805_v47, %v1800_v45  ;;  %v1809_v49 = vld [vmem:[#allocation3] ss:$8 sps:$4 sm:$0xff]   ;;  %v1811_v50 = vld [vmem:[#allocation3 + $0x14] ss:$8 sps:$4 sm:$0xff]  }
  0x6c   : > { %1033 = vmatprep.subr.bf16.mxu0 %v281_v28  ;;  %2233 = vst [vmem:[#allocation43_spill] sm:$0xff] %v1805_v47  ;;  %v1815_v51 = vld [vmem:[#allocation3 + $0x10] ss:$8 sps:$4 sm:$0xff]   ;;  %v1817_v52 = vld [vmem:[#allocation3 + $0x24] ss:$8 sps:$4 sm:$0xff]  }
  0x6d   : > { %v1821_v53 = vld [vmem:[#allocation3 + $0x20] ss:$8 sps:$4 sm:$0xff]   ;;  %v1823_v54 = vld [vmem:[#allocation3 + $0x34] ss:$8 sps:$4 sm:$0xff]   ;;  %v1827_v55 = vld [vmem:[#allocation3 + $0x30] ss:$8 sps:$4 sm:$0xff]  }
  0x6e   : > { %v1829_v56 = vld [vmem:[#allocation3 + $0x44] ss:$8 sps:$4 sm:$0xff]   ;;  %v1833_v57 = vld [vmem:[#allocation3 + $0x40] ss:$8 sps:$4 sm:$0xff]   ;;  %v1835_v58 = vld [vmem:[#allocation3 + $0x54] ss:$8 sps:$4 sm:$0xff]  }
  0x6f   : > { %1034 = vmatpush3.bf16.msra.mxu0 %v273_v32  ;;  %v1839_v59 = vld [vmem:[#allocation3 + $0x50] ss:$8 sps:$4 sm:$0xff]   ;;  %v1841_v60 = vld [vmem:[#allocation3 + $0x64] ss:$8 sps:$4 sm:$0xff]   ;;  %v1845_v61 = vld [vmem:[#allocation3 + $0x60] ss:$8 sps:$4 sm:$0xff]  }
  0x70   : > { %1035 = vmatprep.subr.bf16.mxu0 %v282_v34  ;;  %v1847_v62 = vld [vmem:[#allocation3 + $0x74] ss:$8 sps:$4 sm:$0xff]   ;;  %v1851_v63 = vld [vmem:[#allocation3 + $0x70] ss:$8 sps:$4 sm:$0xff]   ;;  %v1853_v3 = vld [vmem:[#allocation3 + $0x84] ss:$8 sps:$4 sm:$0xff]  }
  0x71   : > { %v1857_v7 = vld [vmem:[#allocation3 + $0x80] ss:$8 sps:$4 sm:$0xff]   ;;  %v1859_v8 = vld [vmem:[#allocation3 + $0x94] ss:$8 sps:$4 sm:$0xff]   ;;  %v1863_v13 = vld [vmem:[#allocation3 + $0x90] ss:$8 sps:$4 sm:$0xff]  }
  0x72   : > { %v1865_v14 = vld [vmem:[#allocation3 + $0xa4] ss:$8 sps:$4 sm:$0xff]   ;;  %v1869_v19 = vld [vmem:[#allocation3 + $0xa0] ss:$8 sps:$4 sm:$0xff]   ;;  %v1871_v20 = vld [vmem:[#allocation3 + $0xb4] ss:$8 sps:$4 sm:$0xff]  }
  0x73   : > { %1036 = vmatpush3.bf16.msra.mxu0 %v274_v38  ;;  %v1875_v25 = vld [vmem:[#allocation3 + $0xb0] ss:$8 sps:$4 sm:$0xff]   ;;  %v1877_v26 = vld [vmem:[#allocation3 + $0xc4] ss:$8 sps:$4 sm:$0xff]   ;;  %v1881_v28 = vld [vmem:[#allocation3 + $0xc0] ss:$8 sps:$4 sm:$0xff]  }
  0x74   : > { %1037 = vmatprep.subr.bf16.mxu0 %v283_v40  ;;  %v1883_v32 = vld [vmem:[#allocation3 + $0xd4] ss:$8 sps:$4 sm:$0xff]   ;;  %v1887_v34 = vld [vmem:[#allocation3 + $0xd0] ss:$8 sps:$4 sm:$0xff]   ;;  %v1889_v38 = vld [vmem:[#allocation3 + $0xe4] ss:$8 sps:$4 sm:$0xff]  }
  0x75   : > { %v1893_v40 = vld [vmem:[#allocation3 + $0xe0] ss:$8 sps:$4 sm:$0xff]  }
  0x77   : > { %1038 = vmatpush3.bf16.msra.mxu0 %v275_v44  ;;  %v1895_v44 = vld [vmem:[#allocation3 + $0xf4] ss:$8 sps:$4 sm:$0xff]  }
  0x78   : > { %1039 = vmatprep.subr.bf16.mxu0 %v284_v46  ;;  %v1899_v46 = vld [vmem:[#allocation3 + $0xf0] ss:$8 sps:$4 sm:$0xff]  }
  0x7b   : > { %1040 = vmatpush3.bf16.msra.mxu0 %v276_v48 }
  0x7e   : > { %478 = vmatmul.mubr.bf16.vlgmr.msra.gmra.mrb[0].mxu0 %v1809_v49 }
  0x7f   : > { %485 = vmatprep.mubr.bf16.mxu0 %v1811_v50 }
  0x86   : > { %486 = vmatmul.mubr.bf16.gmra.mrb[4].mxu0 %v1815_v51 }
  0x87   : > { %493 = vmatprep.mubr.bf16.mxu0 %v1817_v52 }
  0x8e   : > { %494 = vmatmul.mubr.bf16.gmra.mrb[8].mxu0 %v1821_v53 }
  0x8f   : > { %501 = vmatprep.mubr.bf16.mxu0 %v1823_v54 }
  0x96   : > { %502 = vmatmul.mubr.bf16.gmra.mrb[12].mxu0 %v1827_v55 }
  0x97   : > { %509 = vmatprep.mubr.bf16.mxu0 %v1829_v56 }
  0x9e   : > { %510 = vmatmul.mubr.bf16.gmra.mrb[16].mxu0 %v1833_v57 }
  0x9f   : > { %517 = vmatprep.mubr.bf16.mxu0 %v1835_v58 }
  0xa6   : > { %518 = vmatmul.mubr.bf16.gmra.mrb[20].mxu0 %v1839_v59 }
  0xa7   : > { %525 = vmatprep.mubr.bf16.mxu0 %v1841_v60 }
  0xae   : > { %526 = vmatmul.mubr.bf16.gmra.mrb[24].mxu0 %v1845_v61 }
  0xaf   : > { %533 = vmatprep.mubr.bf16.mxu0 %v1847_v62 }
  0xb6   : > { %534 = vmatmul.mubr.bf16.gmra.mrb[28].mxu0 %v1851_v63 }
  0xb7   : > { %541 = vmatprep.mubr.bf16.mxu0 %v1853_v3 }
  0xbe   : > { %542 = vmatmul.mubr.bf16.gmra.mrb[32].mxu0 %v1857_v7 }
  0xbf   : > { %549 = vmatprep.mubr.bf16.mxu0 %v1859_v8 }
  0xc6   : > { %550 = vmatmul.mubr.bf16.gmra.mrb[36].mxu0 %v1863_v13 }
  0xc7   : > { %557 = vmatprep.mubr.bf16.mxu0 %v1865_v14 }
  0xce   : > { %558 = vmatmul.mubr.bf16.gmra.mrb[40].mxu0 %v1869_v19 }
  0xcf   : > { %565 = vmatprep.mubr.bf16.mxu0 %v1871_v20 }
  0xd6   : > { %566 = vmatmul.mubr.bf16.gmra.mrb[44].mxu0 %v1875_v25 }
  0xd7   : > { %573 = vmatprep.mubr.bf16.mxu0 %v1877_v26 }
  0xde   : > { %574 = vmatmul.mubr.bf16.gmra.mrb[48].mxu0 %v1881_v28 }
  0xdf   : > { %581 = vmatprep.mubr.bf16.mxu0 %v1883_v32 }
  0xe6   : > { %582 = vmatmul.mubr.bf16.gmra.mrb[52].mxu0 %v1887_v34 }
  0xe7   : > { %589 = vmatprep.mubr.bf16.mxu0 %v1889_v38 }
  0xee   : > { %590 = vmatmul.mubr.bf16.gmra.mrb[56].mxu0 %v1893_v40 }
  0xef   : > { %597 = vmatprep.mubr.bf16.mxu0 %v1895_v44 }
  0xf6   : > { %598 = vmatmul.mubr.bf16.gmra.mrb[60].mxu0 %v1899_v46 }
 0x151   : > { %v1041_v48 = vpop.f32.mrb[0].mxu0 }
 0x152   : > { %v1042_v43 = vpop.f32.mrb[1].mxu0 }
 0x153   : > { %v1902_v42 = vadd.f32 %v1042_v43, %v1041_v48  ;;  %v1044_v37 = vpop.f32.mrb[2].mxu0 }
 0x154   : > { %v1045_v36 = vpop.f32.mrb[3].mxu0 }
 0x155   : > { %v1046_v31 = vadd.f32 %v1045_v36, %v1044_v37 }
 0x157   : > { %v606_v30 = vpack.c.bf16 %v1046_v31, %v1902_v42 }
 0x159   : > { %v1047_v24 = vpop.f32.mrb[4].mxu0 }
 0x15a   : > { %v1048_v23 = vpop.f32.mrb[5].mxu0 }
 0x15b   : > { %v1905_v18 = vadd.f32 %v1048_v23, %v1047_v24  ;;  %v1050_v17 = vpop.f32.mrb[6].mxu0 }
 0x15c   : > { %v1051_v12 = vpop.f32.mrb[7].mxu0 }
 0x15d   : > { %v1907_v11 = vadd.f32 %v1051_v12, %v1050_v17 }
 0x15f   : > { %v607_v6 = vpack.c.bf16 %v1907_v11, %v1905_v18 }
 0x161   : > { %v1053_v5 = vpop.f32.mrb[8].mxu0 }
 0x162   : > { %v1054_v1 = vpop.f32.mrb[9].mxu0 }
 0x163   : > { %v1911_v43 = vadd.f32 %v1054_v1, %v1053_v5  ;;  %v1056_v48 = vpop.f32.mrb[10].mxu0 }
 0x164   : > { %v1057_v0 = vpop.f32.mrb[11].mxu0 }
 0x165   : > { %v1913_v36 = vadd.f32 %v1057_v0, %v1056_v48 }
 0x169   : > { %v1059_v23 = vpop.f32.mrb[12].mxu0 }
 0x16a   : > { %v1060_v24 = vpop.f32.mrb[13].mxu0 }
 0x16b   : > { %v1917_v37 = vadd.f32 %v1060_v24, %v1059_v23  ;;  %v1062_v12 = vpop.f32.mrb[14].mxu0 }
 0x16c   : > { %v1063_v17 = vpop.f32.mrb[15].mxu0 }
 0x16d   : > { %v1919_v42 = vadd.f32 %v1063_v17, %v1062_v12 }
 0x171   : > { %v1065_v1 = vpop.f32.mrb[16].mxu0 }
 0x172   : > { %v1066_v5 = vpop.f32.mrb[17].mxu0 }
 0x173   : > { %v1923_v18 = vadd.f32 %v1066_v5, %v1065_v1  ;;  %v1068_v0 = vpop.f32.mrb[18].mxu0 }
 0x174   : > { %v1069_v48 = vpop.f32.mrb[19].mxu0 }
 0x175   : > { %v1925_v47 = vadd.f32 %v1069_v48, %v1068_v0 }
 0x179   : > { %v1071_v23 = vpop.f32.mrb[20].mxu0 }
 0x17a   : > { %v1072_v24 = vpop.f32.mrb[21].mxu0 }
 0x17b   : > { %v1929_v45 = vadd.f32 %v1072_v24, %v1071_v23  ;;  %v1074_v12 = vpop.f32.mrb[22].mxu0 }
 0x17c   : > { %v1075_v17 = vpop.f32.mrb[23].mxu0 }
 0x17d   : > { %v1931_v41 = vadd.f32 %v1075_v17, %v1074_v12 }
 0x181   : > { %v1077_v1 = vpop.f32.mrb[24].mxu0 }
 0x182   : > { %v1078_v5 = vpop.f32.mrb[25].mxu0 }
 0x183   : > { %v1935_v39 = vadd.f32 %v1078_v5, %v1077_v1  ;;  %v1080_v0 = vpop.f32.mrb[26].mxu0 }
 0x184   : > { %v1081_v48 = vpop.f32.mrb[27].mxu0 }
 0x185   : > { %v1937_v35 = vadd.f32 %v1081_v48, %v1080_v0 }
 0x189   : > { %v1083_v23 = vpop.f32.mrb[28].mxu0 }
 0x18a   : > { %v1084_v24 = vpop.f32.mrb[29].mxu0 }
 0x18b   : > { %v1941_v33 = vadd.f32 %v1084_v24, %v1083_v23  ;;  %v1086_v12 = vpop.f32.mrb[30].mxu0 }
 0x18c   : > { %v1087_v17 = vpop.f32.mrb[31].mxu0 }
 0x18d   : > { %v1943_v29 = vadd.f32 %v1087_v17, %v1086_v12 }
 0x191   : > { %v1089_v1 = vpop.f32.mrb[32].mxu0 }
 0x192   : > { %v1090_v5 = vpop.f32.mrb[33].mxu0 }
 0x193   : > { %v1091_v27 = vadd.f32 %v1090_v5, %v1089_v1  ;;  %v1092_v22 = vpop.f32.mrb[34].mxu0 }
 0x194   : > { %v1093_v0 = vpop.f32.mrb[35].mxu0 }
 0x195   : > { %v1094_v48 = vadd.f32 %v1093_v0, %v1092_v22 }
 0x197   : > { %v614_v21 = vpack.c.bf16 %v1094_v48, %v1091_v27 }
 0x199   : > { %v1095_v16 = vpop.f32.mrb[36].mxu0  ;;  %1137 = vmatprep.subr.bf16.mxu1 %v614_v21  ;;  %v2234_v21 = vpack.c.bf16 %v1913_v36, %v1911_v43  ;;  %v2236_v36 = vpack.c.bf16 %v1925_v47, %v1923_v18  ;;  %v2238_v18 = vpack.c.bf16 %v1937_v35, %v1935_v39  ;;  %v1996_v35 = vstv %s783_s24 }
 0x19a   : > { %v1096_v31 = vpop.f32.mrb[37].mxu0  ;;  %1138 = vmatpush3.bf16.msra.mxu1 %v606_v30 }
 0x19b   : > { %v1097_v23 = vadd.f32 %v1096_v31, %v1095_v16  ;;  %v1098_v24 = vpop.f32.mrb[38].mxu0 }
 0x19c   : > { %v1099_v15 = vpop.f32.mrb[39].mxu0 }
 0x19d   : > { %v1100_v10 = vadd.f32 %v1099_v15, %v1098_v24 }
 0x19f   : > { %v615_v12 = vpack.c.bf16 %v1100_v10, %v1097_v23 }
 0x1a1   : > { %v1101_v17 = vpop.f32.mrb[40].mxu0  ;;  %1139 = vmatprep.subr.bf16.mxu1 %v615_v12 }
 0x1a2   : > { %v1102_v9 = vpop.f32.mrb[41].mxu0  ;;  %1140 = vmatpush3.bf16.msra.mxu1 %v607_v6 }
 0x1a3   : > { %v1103_v11 = vadd.f32 %v1102_v9, %v1101_v17  ;;  %v1104_v4 = vpop.f32.mrb[42].mxu0  ;;  %v2235_v9 = vpack.c.bf16 %v1919_v42, %v1917_v37  ;;  %v2237_v42 = vpack.c.bf16 %v1931_v41, %v1929_v45  ;;  %v2239_v41 = vpack.c.bf16 %v1943_v29, %v1941_v33 }
 0x1a4   : > { %v1105_v1 = vpop.f32.mrb[43].mxu0 }
 0x1a5   : > { %v1106_v5 = vadd.f32 %v1105_v1, %v1104_v4 }
 0x1a7   : > { %v616_v2 = vpack.c.bf16 %v1106_v5, %v1103_v11 }
 0x1a9   : > { %v1107_v22 = vpop.f32.mrb[44].mxu0  ;;  %1141 = vmatprep.subr.bf16.mxu1 %v616_v2 }
 0x1aa   : > { %v1108_v27 = vpop.f32.mrb[45].mxu0  ;;  %1142 = vmatpush3.bf16.msra.mxu1 %v2234_v21 }
 0x1ab   : > { %v1109_v16 = vadd.f32 %v1108_v27, %v1107_v22  ;;  %v1110_v30 = vpop.f32.mrb[46].mxu0 }
 0x1ac   : > { %v1111_v15 = vpop.f32.mrb[47].mxu0 }
 0x1ad   : > { %v1112_v10 = vadd.f32 %v1111_v15, %v1110_v30 }
 0x1af   : > { %v617_v31 = vpack.c.bf16 %v1112_v10, %v1109_v16 }
 0x1b1   : > { %v1113_v0 = vpop.f32.mrb[48].mxu0  ;;  %1143 = vmatprep.subr.bf16.mxu1 %v617_v31 }
 0x1b2   : > { %v1114_v6 = vpop.f32.mrb[49].mxu0  ;;  %1144 = vmatpush3.bf16.msra.mxu1 %v2235_v9 }
 0x1b3   : > { %v1115_v4 = vadd.f32 %v1114_v6, %v1113_v0  ;;  %v1116_v11 = vpop.f32.mrb[50].mxu0 }
 0x1b4   : > { %v1117_v2 = vpop.f32.mrb[51].mxu0 }
 0x1b5   : > { %v1118_v48 = vadd.f32 %v1117_v2, %v1116_v11 }
 0x1b7   : > { %v618_v23 = vpack.c.bf16 %v1118_v48, %v1115_v4 }
 0x1b9   : > { %v1119_v24 = vpop.f32.mrb[52].mxu0  ;;  %1145 = vmatprep.subr.bf16.mxu1 %v618_v23 }
 0x1ba   : > { %v1120_v43 = vpop.f32.mrb[53].mxu0  ;;  %1146 = vmatpush3.bf16.msra.mxu1 %v2236_v36 }
 0x1bb   : > { %v1121_v12 = vadd.f32 %v1120_v43, %v1119_v24  ;;  %v1122_v17 = vpop.f32.mrb[54].mxu0 }
 0x1bc   : > { %v1123_v1 = vpop.f32.mrb[55].mxu0 }
 0x1bd   : > { %v1124_v5 = vadd.f32 %v1123_v1, %v1122_v17  ;;  %v2246_v1 = vld [vmem:[#allocation26_spill] sm:$0xff] }
 0x1bf   : > { %v619_v22 = vpack.c.bf16 %v1124_v5, %v1121_v12 }
 0x1c1   : > { %v1125_v27 = vpop.f32.mrb[56].mxu0  ;;  %1147 = vmatprep.subr.bf16.mxu1 %v619_v22 }
 0x1c2   : > { %v1126_v37 = vpop.f32.mrb[57].mxu0  ;;  %1148 = vmatpush3.bf16.msra.mxu1 %v2237_v42 }
 0x1c3   : > { %v1127_v21 = vadd.f32 %v1126_v37, %v1125_v27  ;;  %v1128_v16 = vpop.f32.mrb[58].mxu0  ;;  %v2247_v27 = vld [vmem:[#allocation27_spill] sm:$0xff] }
 0x1c4   : > { %v1129_v30 = vpop.f32.mrb[59].mxu0 }
 0x1c5   : > { %v1130_v15 = vadd.f32 %v1129_v30, %v1128_v16 }
 0x1c7   : > { %v620_v10 = vpack.c.bf16 %v1130_v15, %v1127_v21 }
 0x1c9   : > { %v1131_v31 = vpop.f32.mrb[60].mxu0  ;;  %1149 = vmatprep.subr.bf16.mxu1 %v620_v10 }
 0x1ca   : > { %v1132_v47 = vpop.f32.mrb[61].mxu0  ;;  %1150 = vmatpush3.bf16.msra.mxu1 %v2238_v18 }
 0x1cb   : > { %v1133_v0 = vadd.f32 %v1132_v47, %v1131_v31  ;;  %v1134_v6 = vpop.f32.mrb[62].mxu0  ;;  %v2248_v47 = vld [vmem:[#allocation30_spill] sm:$0xff] }
 0x1cc   : > { %v1135_v9 = vpop.f32.mrb[63].mxu0 }
 0x1cd   : > { %v1136_v4 = vadd.f32 %v1135_v9, %v1134_v6  ;;  %v2249_v6 = vld [vmem:[#allocation31_spill] sm:$0xff] }
 0x1cf   : > { %v621_v11 = vpack.c.bf16 %v1136_v4, %v1133_v0 }
 0x1d1   : > { %1151 = vmatprep.subr.bf16.mxu1 %v621_v11 }
 0x1d2   : > { %1152 = vmatpush3.bf16.msra.mxu1 %v2239_v41 }
 0x1d5   : > { %655 = vmatmul.mubr.bf16.vlgmr.msra.gmra.mrb[0].mxu1 %v1809_v49 }
 0x1d6   : > { %662 = vmatprep.mubr.bf16.mxu1 %v1811_v50 }
 0x1dd   : > { %663 = vmatmul.mubr.bf16.gmra.mrb[4].mxu1 %v1815_v51 }
 0x1de   : > { %670 = vmatprep.mubr.bf16.mxu1 %v1817_v52  ;;  %v2240_v52 = vld [vmem:[#allocation14_spill] sm:$0xff] }
 0x1e5   : > { %671 = vmatmul.mubr.bf16.gmra.mrb[8].mxu1 %v1821_v53 }
 0x1e6   : > { %678 = vmatprep.mubr.bf16.mxu1 %v1823_v54 }
 0x1ed   : > { %679 = vmatmul.mubr.bf16.gmra.mrb[12].mxu1 %v1827_v55  ;;  %v2241_v55 = vld [vmem:[#allocation15_spill] sm:$0xff] }
 0x1ee   : > { %686 = vmatprep.mubr.bf16.mxu1 %v1829_v56 }
 0x1f5   : > { %687 = vmatmul.mubr.bf16.gmra.mrb[16].mxu1 %v1833_v57 }
 0x1f6   : > { %694 = vmatprep.mubr.bf16.mxu1 %v1835_v58 }
 0x1fd   : > { %695 = vmatmul.mubr.bf16.gmra.mrb[20].mxu1 %v1839_v59 }
 0x1fe   : > { %702 = vmatprep.mubr.bf16.mxu1 %v1841_v60 }
 0x205   : > { %703 = vmatmul.mubr.bf16.gmra.mrb[24].mxu1 %v1845_v61 }
 0x206   : > { %710 = vmatprep.mubr.bf16.mxu1 %v1847_v62 }
 0x20d   : > { %711 = vmatmul.mubr.bf16.gmra.mrb[28].mxu1 %v1851_v63 }
 0x20e   : > { %718 = vmatprep.mubr.bf16.mxu1 %v1853_v3  ;;  %v2242_v3 = vld [vmem:[#allocation18_spill] sm:$0xff] }
 0x215   : > { %719 = vmatmul.mubr.bf16.gmra.mrb[32].mxu1 %v1857_v7 }
 0x216   : > { %726 = vmatprep.mubr.bf16.mxu1 %v1859_v8 }
 0x21d   : > { %727 = vmatmul.mubr.bf16.gmra.mrb[36].mxu1 %v1863_v13  ;;  %v2243_v13 = vld [vmem:[#allocation19_spill] sm:$0xff] }
 0x21e   : > { %734 = vmatprep.mubr.bf16.mxu1 %v1865_v14 }
 0x225   : > { %735 = vmatmul.mubr.bf16.gmra.mrb[40].mxu1 %v1869_v19 }
 0x226   : > { %742 = vmatprep.mubr.bf16.mxu1 %v1871_v20 }
 0x22d   : > { %743 = vmatmul.mubr.bf16.gmra.mrb[44].mxu1 %v1875_v25 }
 0x22e   : > { %750 = vmatprep.mubr.bf16.mxu1 %v1877_v26 }
 0x235   : > { %751 = vmatmul.mubr.bf16.gmra.mrb[48].mxu1 %v1881_v28 }
 0x236   : > { %758 = vmatprep.mubr.bf16.mxu1 %v1883_v32 }
 0x23d   : > { %759 = vmatmul.mubr.bf16.gmra.mrb[52].mxu1 %v1887_v34 }
 0x23e   : > { %766 = vmatprep.mubr.bf16.mxu1 %v1889_v38  ;;  %v2244_v38 = vld [vmem:[#allocation22_spill] sm:$0xff] }
 0x245   : > { %767 = vmatmul.mubr.bf16.gmra.mrb[56].mxu1 %v1893_v40 }
 0x246   : > { %774 = vmatprep.mubr.bf16.mxu1 %v1895_v44 }
 0x24d   : > { %775 = vmatmul.mubr.bf16.gmra.mrb[60].mxu1 %v1899_v46  ;;  %v2245_v46 = vld [vmem:[#allocation23_spill] sm:$0xff] }
 0x2a8   : > { %v1153_v29 = vpop.f32.mrb[0].mxu1 }
 0x2a9   : > { %v1154_v33 = vpop.f32.mrb[1].mxu1 }
 0x2aa   : > { %v1155_v39 = vadd.f32 %v1154_v33, %v1153_v29  ;;  %v1156_v45 = vpop.f32.mrb[2].mxu1 }
 0x2ab   : > { %v1157_v49 = vpop.f32.mrb[3].mxu1 }
 0x2ac   : > { %v785_v50 = vmul.f32 %v1155_v39, %v1996_v35  ;;  %v1158_v51 = vadd.f32 %v1157_v49, %v1156_v45  ;;  %v2250_v49 = vld [vmem:[#allocation34_spill] sm:$0xff] }
 0x2ae   : > { %v817_v53 = vsub.f32 %v785_v50, %v2240_v52  ;;  %v786_v54 = vmul.f32 %v1158_v51, %v1996_v35  ;;  %v2251_v52 = vld [vmem:[#allocation35_spill] sm:$0xff] }
 0x2b0   : > { %849 = vst [vmem:[%s2003_s27] sm:$0xff] %v817_v53  ;;  %v818_v56 = vsub.f32 %v786_v54, %v2241_v55  ;;  %v1159_v57 = vpop.f32.mrb[4].mxu1 }
 0x2b1   : > { %v1160_v58 = vpop.f32.mrb[5].mxu1 }
 0x2b2   : > { %850 = vst [vmem:[%s2003_s27 + $0x8] sm:$0xff] %v818_v56  ;;  %v1161_v59 = vadd.f32 %v1160_v58, %v1159_v57  ;;  %v1162_v60 = vpop.f32.mrb[6].mxu1 }
 0x2b3   : > { %v1163_v61 = vpop.f32.mrb[7].mxu1 }
 0x2b4   : > { %v787_v62 = vmul.f32 %v1161_v59, %v1996_v35  ;;  %v1164_v63 = vadd.f32 %v1163_v61, %v1162_v60  ;;  %v2252_v61 = vld [vmem:[#allocation38_spill] sm:$0xff] }
 0x2b6   : > { %v819_v7 = vsub.f32 %v787_v62, %v2242_v3  ;;  %v788_v8 = vmul.f32 %v1164_v63, %v1996_v35  ;;  %v2253_v3 = vld [vmem:[#allocation39_spill] sm:$0xff] }
 0x2b8   : > { %851 = vst [vmem:[%s2003_s27 + $0x10] sm:$0xff] %v819_v7  ;;  %v820_v14 = vsub.f32 %v788_v8, %v2243_v13  ;;  %v1165_v19 = vpop.f32.mrb[8].mxu1 }
 0x2b9   : > { %v1166_v20 = vpop.f32.mrb[9].mxu1 }
 0x2ba   : > { %852 = vst [vmem:[%s2003_s27 + $0x18] sm:$0xff] %v820_v14  ;;  %v1167_v25 = vadd.f32 %v1166_v20, %v1165_v19  ;;  %v1168_v26 = vpop.f32.mrb[10].mxu1 }
 0x2bb   : > { %v1169_v28 = vpop.f32.mrb[11].mxu1 }
 0x2bc   : > { %v789_v32 = vmul.f32 %v1167_v25, %v1996_v35  ;;  %v1170_v34 = vadd.f32 %v1169_v28, %v1168_v26  ;;  %v2254_v28 = vld [vmem:[#allocation42_spill] sm:$0xff] }
 0x2be   : > { %v821_v40 = vsub.f32 %v789_v32, %v2244_v38  ;;  %v790_v44 = vmul.f32 %v1170_v34, %v1996_v35  ;;  %v2255_v38 = vld [vmem:[#allocation43_spill] sm:$0xff] }
 0x2c0   : > { %853 = vst [vmem:[%s2003_s27 + $0x20] sm:$0xff] %v821_v40  ;;  %v822_v2 = vsub.f32 %v790_v44, %v2245_v46  ;;  %v1171_v48 = vpop.f32.mrb[12].mxu1 }
 0x2c1   : > { %v1172_v23 = vpop.f32.mrb[13].mxu1 }
 0x2c2   : > { %854 = vst [vmem:[%s2003_s27 + $0x28] sm:$0xff] %v822_v2  ;;  %v1173_v24 = vadd.f32 %v1172_v23, %v1171_v48  ;;  %v1174_v43 = vpop.f32.mrb[14].mxu1 }
 0x2c3   : > { %v1175_v36 = vpop.f32.mrb[15].mxu1 }
 0x2c4   : > { %v791_v12 = vmul.f32 %v1173_v24, %v1996_v35  ;;  %v1176_v17 = vadd.f32 %v1175_v36, %v1174_v43  ;;  %v2256_v36 = vld [vmem:[#allocation12_spill] sm:$0xff] }
 0x2c6   : > { %v823_v5 = vsub.f32 %v791_v12, %v2246_v1  ;;  %v792_v22 = vmul.f32 %v1176_v17, %v1996_v35  ;;  %v2257_v1 = vld [vmem:[#allocation13_spill] sm:$0xff] }
 0x2c8   : > { %855 = vst [vmem:[%s2003_s27 + $0x30] sm:$0xff] %v823_v5  ;;  %v824_v37 = vsub.f32 %v792_v22, %v2247_v27  ;;  %v1177_v42 = vpop.f32.mrb[16].mxu1 }
 0x2c9   : > { %v1178_v21 = vpop.f32.mrb[17].mxu1 }
 0x2ca   : > { %856 = vst [vmem:[%s2003_s27 + $0x38] sm:$0xff] %v824_v37  ;;  %v1179_v16 = vadd.f32 %v1178_v21, %v1177_v42  ;;  %v1180_v30 = vpop.f32.mrb[18].mxu1 }
 0x2cb   : > { %v1181_v15 = vpop.f32.mrb[19].mxu1 }
 0x2cc   : > { %v793_v10 = vmul.f32 %v1179_v16, %v1996_v35  ;;  %v1182_v31 = vadd.f32 %v1181_v15, %v1180_v30  ;;  %v2258_v15 = vld [vmem:[#allocation16_spill] sm:$0xff] }
 0x2ce   : > { %v825_v18 = vsub.f32 %v793_v10, %v2248_v47  ;;  %v794_v0 = vmul.f32 %v1182_v31, %v1996_v35  ;;  %v2259_v47 = vld [vmem:[#allocation17_spill] sm:$0xff] }
 0x2d0   : > { %857 = vst [vmem:[%s2003_s27 + $0x40] sm:$0xff] %v825_v18  ;;  %v826_v9 = vsub.f32 %v794_v0, %v2249_v6  ;;  %v1183_v4 = vpop.f32.mrb[20].mxu1 }
 0x2d1   : > { %v1184_v11 = vpop.f32.mrb[21].mxu1 }
 0x2d2   : > { %858 = vst [vmem:[%s2003_s27 + $0x48] sm:$0xff] %v826_v9  ;;  %v1185_v41 = vadd.f32 %v1184_v11, %v1183_v4  ;;  %v1186_v29 = vpop.f32.mrb[22].mxu1 }
 0x2d3   : > { %v1187_v33 = vpop.f32.mrb[23].mxu1 }
 0x2d4   : > { %v795_v39 = vmul.f32 %v1185_v41, %v1996_v35  ;;  %v1188_v45 = vadd.f32 %v1187_v33, %v1186_v29  ;;  %v2260_v33 = vld [vmem:[#allocation20_spill] sm:$0xff] }
 0x2d6   : > { %v827_v50 = vsub.f32 %v795_v39, %v2250_v49  ;;  %v796_v51 = vmul.f32 %v1188_v45, %v1996_v35  ;;  %v2261_v49 = vld [vmem:[#allocation21_spill] sm:$0xff] }
 0x2d8   : > { %859 = vst [vmem:[%s2003_s27 + $0x50] sm:$0xff] %v827_v50  ;;  %v828_v53 = vsub.f32 %v796_v51, %v2251_v52  ;;  %v1189_v54 = vpop.f32.mrb[24].mxu1 }
 0x2d9   : > { %v1190_v55 = vpop.f32.mrb[25].mxu1 }
 0x2da   : > { %860 = vst [vmem:[%s2003_s27 + $0x58] sm:$0xff] %v828_v53  ;;  %v1191_v56 = vadd.f32 %v1190_v55, %v1189_v54  ;;  %v1192_v57 = vpop.f32.mrb[26].mxu1 }
 0x2db   : > { %v1193_v58 = vpop.f32.mrb[27].mxu1 }
 0x2dc   : > { %v797_v59 = vmul.f32 %v1191_v56, %v1996_v35  ;;  %v1194_v60 = vadd.f32 %v1193_v58, %v1192_v57  ;;  %v2262_v58 = vld [vmem:[#allocation24_spill] sm:$0xff] }
 0x2de   : > { %v829_v62 = vsub.f32 %v797_v59, %v2252_v61  ;;  %v798_v63 = vmul.f32 %v1194_v60, %v1996_v35  ;;  %v2263_v61 = vld [vmem:[#allocation25_spill] sm:$0xff] }
 0x2e0   : > { %861 = vst [vmem:[%s2003_s27 + $0x60] sm:$0xff] %v829_v62  ;;  %v830_v7 = vsub.f32 %v798_v63, %v2253_v3  ;;  %v1195_v8 = vpop.f32.mrb[28].mxu1 }
 0x2e1   : > { %v1196_v13 = vpop.f32.mrb[29].mxu1 }
 0x2e2   : > { %862 = vst [vmem:[%s2003_s27 + $0x68] sm:$0xff] %v830_v7  ;;  %v1197_v14 = vadd.f32 %v1196_v13, %v1195_v8  ;;  %v1198_v19 = vpop.f32.mrb[30].mxu1 }
 0x2e3   : > { %v1199_v20 = vpop.f32.mrb[31].mxu1 }
 0x2e4   : > { %v799_v25 = vmul.f32 %v1197_v14, %v1996_v35  ;;  %v1200_v26 = vadd.f32 %v1199_v20, %v1198_v19  ;;  %v2264_v20 = vld [vmem:[#allocation28_spill] sm:$0xff] }
 0x2e6   : > { %v831_v32 = vsub.f32 %v799_v25, %v2254_v28  ;;  %v800_v34 = vmul.f32 %v1200_v26, %v1996_v35  ;;  %v2265_v28 = vld [vmem:[#allocation29_spill] sm:$0xff] }
 0x2e8   : > { %863 = vst [vmem:[%s2003_s27 + $0x70] sm:$0xff] %v831_v32  ;;  %v832_v40 = vsub.f32 %v800_v34, %v2255_v38  ;;  %v1201_v44 = vpop.f32.mrb[32].mxu1 }
 0x2e9   : > { %v1202_v46 = vpop.f32.mrb[33].mxu1 }
 0x2ea   : > { %864 = vst [vmem:[%s2003_s27 + $0x78] sm:$0xff] %v832_v40  ;;  %v1203_v2 = vadd.f32 %v1202_v46, %v1201_v44  ;;  %v1204_v48 = vpop.f32.mrb[34].mxu1 }
 0x2eb   : > { %v1205_v23 = vpop.f32.mrb[35].mxu1 }
 0x2ec   : > { %v801_v24 = vmul.f32 %v1203_v2, %v1996_v35  ;;  %v1206_v43 = vadd.f32 %v1205_v23, %v1204_v48  ;;  %v2266_v23 = vld [vmem:[#allocation32_spill] sm:$0xff] }
 0x2ee   : > { %v833_v12 = vsub.f32 %v801_v24, %v2256_v36  ;;  %v802_v17 = vmul.f32 %v1206_v43, %v1996_v35  ;;  %v2267_v36 = vld [vmem:[#allocation33_spill] sm:$0xff] }
 0x2f0   : > { %865 = vst [vmem:[%s2003_s27 + $0x80] sm:$0xff] %v833_v12  ;;  %v834_v5 = vsub.f32 %v802_v17, %v2257_v1  ;;  %v1207_v22 = vpop.f32.mrb[36].mxu1 }
 0x2f1   : > { %v1208_v27 = vpop.f32.mrb[37].mxu1 }
 0x2f2   : > { %866 = vst [vmem:[%s2003_s27 + $0x88] sm:$0xff] %v834_v5  ;;  %v1209_v37 = vadd.f32 %v1208_v27, %v1207_v22  ;;  %v1210_v42 = vpop.f32.mrb[38].mxu1 }
 0x2f3   : > { %v1211_v21 = vpop.f32.mrb[39].mxu1 }
 0x2f4   : > { %v803_v16 = vmul.f32 %v1209_v37, %v1996_v35  ;;  %v1212_v30 = vadd.f32 %v1211_v21, %v1210_v42  ;;  %v2268_v21 = vld [vmem:[#allocation36_spill] sm:$0xff] }
 0x2f6   : > { %v835_v10 = vsub.f32 %v803_v16, %v2258_v15  ;;  %v804_v31 = vmul.f32 %v1212_v30, %v1996_v35  ;;  %v2269_v15 = vld [vmem:[#allocation37_spill] sm:$0xff] }
 0x2f8   : > { %867 = vst [vmem:[%s2003_s27 + $0x90] sm:$0xff] %v835_v10  ;;  %v836_v18 = vsub.f32 %v804_v31, %v2259_v47  ;;  %v1213_v0 = vpop.f32.mrb[40].mxu1 }
 0x2f9   : > { %v1214_v6 = vpop.f32.mrb[41].mxu1 }
 0x2fa   : > { %868 = vst [vmem:[%s2003_s27 + $0x98] sm:$0xff] %v836_v18  ;;  %v1215_v9 = vadd.f32 %v1214_v6, %v1213_v0  ;;  %v1216_v4 = vpop.f32.mrb[42].mxu1 }
 0x2fb   : > { %v1217_v11 = vpop.f32.mrb[43].mxu1 }
 0x2fc   : > { %v805_v41 = vmul.f32 %v1215_v9, %v1996_v35  ;;  %v1218_v29 = vadd.f32 %v1217_v11, %v1216_v4  ;;  %v2270_v11 = vld [vmem:[#allocation40_spill] sm:$0xff] }
 0x2fe   : > { %v837_v39 = vsub.f32 %v805_v41, %v2260_v33  ;;  %v806_v45 = vmul.f32 %v1218_v29, %v1996_v35  ;;  %v2271_v33 = vld [vmem:[#allocation41_spill] sm:$0xff] }
 0x300   : > { %869 = vst [vmem:[%s2003_s27 + $0xa0] sm:$0xff] %v837_v39  ;;  %v838_v50 = vsub.f32 %v806_v45, %v2261_v49  ;;  %v1219_v51 = vpop.f32.mrb[44].mxu1 }
 0x301   : > { %v1220_v52 = vpop.f32.mrb[45].mxu1 }
 0x302   : > { %870 = vst [vmem:[%s2003_s27 + $0xa8] sm:$0xff] %v838_v50  ;;  %v1221_v53 = vadd.f32 %v1220_v52, %v1219_v51  ;;  %v1222_v54 = vpop.f32.mrb[46].mxu1 }
 0x303   : > { %v1223_v55 = vpop.f32.mrb[47].mxu1 }
 0x304   : > { %v807_v56 = vmul.f32 %v1221_v53, %v1996_v35  ;;  %v1224_v57 = vadd.f32 %v1223_v55, %v1222_v54 }
 0x306   : > { %v839_v59 = vsub.f32 %v807_v56, %v2262_v58  ;;  %v808_v60 = vmul.f32 %v1224_v57, %v1996_v35 }
 0x308   : > { %871 = vst [vmem:[%s2003_s27 + $0xb0] sm:$0xff] %v839_v59  ;;  %v840_v62 = vsub.f32 %v808_v60, %v2263_v61  ;;  %v1225_v63 = vpop.f32.mrb[48].mxu1 }
 0x309   : > { %v1226_v3 = vpop.f32.mrb[49].mxu1 }
 0x30a   : > { %872 = vst [vmem:[%s2003_s27 + $0xb8] sm:$0xff] %v840_v62  ;;  %v1227_v7 = vadd.f32 %v1226_v3, %v1225_v63  ;;  %v1228_v8 = vpop.f32.mrb[50].mxu1 }
 0x30b   : > { %v1229_v13 = vpop.f32.mrb[51].mxu1 }
 0x30c   : > { %v809_v14 = vmul.f32 %v1227_v7, %v1996_v35  ;;  %v1230_v19 = vadd.f32 %v1229_v13, %v1228_v8 }
 0x30e   : > { %v841_v25 = vsub.f32 %v809_v14, %v2264_v20  ;;  %v810_v26 = vmul.f32 %v1230_v19, %v1996_v35 }
 0x310   : > { %873 = vst [vmem:[%s2003_s27 + $0xc0] sm:$0xff] %v841_v25  ;;  %v842_v32 = vsub.f32 %v810_v26, %v2265_v28  ;;  %v1231_v34 = vpop.f32.mrb[52].mxu1 }
 0x311   : > { %v1232_v38 = vpop.f32.mrb[53].mxu1 }
 0x312   : > { %874 = vst [vmem:[%s2003_s27 + $0xc8] sm:$0xff] %v842_v32  ;;  %v1233_v40 = vadd.f32 %v1232_v38, %v1231_v34  ;;  %v1234_v44 = vpop.f32.mrb[54].mxu1 }
 0x313   : > { %v1235_v46 = vpop.f32.mrb[55].mxu1 }
 0x314   : > { %v811_v2 = vmul.f32 %v1233_v40, %v1996_v35  ;;  %v1236_v48 = vadd.f32 %v1235_v46, %v1234_v44 }
 0x316   : > { %v843_v24 = vsub.f32 %v811_v2, %v2266_v23  ;;  %v812_v43 = vmul.f32 %v1236_v48, %v1996_v35 }
 0x318   : > { %875 = vst [vmem:[%s2003_s27 + $0xd0] sm:$0xff] %v843_v24  ;;  %v844_v12 = vsub.f32 %v812_v43, %v2267_v36  ;;  %v1237_v17 = vpop.f32.mrb[56].mxu1 }
 0x319   : > { %v1238_v1 = vpop.f32.mrb[57].mxu1 }
 0x31a   : > { %876 = vst [vmem:[%s2003_s27 + $0xd8] sm:$0xff] %v844_v12  ;;  %v1239_v5 = vadd.f32 %v1238_v1, %v1237_v17  ;;  %v1240_v22 = vpop.f32.mrb[58].mxu1 }
 0x31b   : > { %v1241_v27 = vpop.f32.mrb[59].mxu1 }
 0x31c   : > { %v813_v37 = vmul.f32 %v1239_v5, %v1996_v35  ;;  %v1242_v42 = vadd.f32 %v1241_v27, %v1240_v22 }
 0x31e   : > { %v845_v16 = vsub.f32 %v813_v37, %v2268_v21  ;;  %v814_v30 = vmul.f32 %v1242_v42, %v1996_v35 }
 0x320   : > { %877 = vst [vmem:[%s2003_s27 + $0xe0] sm:$0xff] %v845_v16  ;;  %v846_v10 = vsub.f32 %v814_v30, %v2269_v15  ;;  %v1243_v31 = vpop.f32.mrb[60].mxu1 }
 0x321   : > { %v1244_v47 = vpop.f32.mrb[61].mxu1 }
 0x322   : > { %878 = vst [vmem:[%s2003_s27 + $0xe8] sm:$0xff] %v846_v10  ;;  %v1245_v18 = vadd.f32 %v1244_v47, %v1243_v31  ;;  %v1246_v0 = vpop.f32.mrb[62].mxu1 }
 0x323   : > { %v1247_v6 = vpop.f32.mrb[63].mxu1 }
 0x324   : > { %v815_v9 = vmul.f32 %v1245_v18, %v1996_v35  ;;  %v1248_v4 = vadd.f32 %v1247_v6, %v1246_v0 }
 0x326   : > { %v847_v41 = vsub.f32 %v815_v9, %v2270_v11  ;;  %v816_v29 = vmul.f32 %v1248_v4, %v1996_v35 }
 0x328   : > { %879 = vst [vmem:[%s2003_s27 + $0xf0] sm:$0xff] %v847_v41  ;;  %v848_v39 = vsub.f32 %v816_v29, %v2271_v33 }
 0x32a   : > { %880 = vst [vmem:[%s2003_s27 + $0xf8] sm:$0xff] %v848_v39 }
 0x32b   : > { %1431 = shalt.err (!%p1428_p11)
}
 0x32c   : > { %s1432_s5 = scalar_lea.hbm %s2100_s12, 4096  ;;  %s1436_s29 = scalar_lea.hbm %s2152_s3, 8192 }
 0x32d   : > { %p1433_p13 = scmp.ne.s32.totalorder %s2100_s12, %s1432_s5  ;;  %p1437_p12 = scmp.lt.u32.totalorder %s2100_s12, %s2152_s3 }
 0x32e   : > { %p1438_p7 = scmp.lt.u32.totalorder %s1436_s29, %s1432_s5  ;;  %p1440_p8 = scmp.lt.u32.totalorder %s1432_s5, %s2100_s12 }
 0x32f   : > { %p1434_p2 = pnand %p1433_p13, %p2272_p9 }
 0x330   : > { %p1439_p3 = por %p1438_p7, %p1437_p12 }
 0x331   : > { %p1435_p6 = pneg %p1434_p2 }
 0x332   : > { %p1441_p10 = por %p1440_p8, %p1439_p3 }
 0x334   : > { %p1442_p1 = pnand %p1441_p10, %p1435_p6 }
 0x336   : > { %1445 = shalt.err (!%p1442_p1)
}
 0x337   : > { %s1496_s13 = smov 128   ;;  %s1497_s24 = smov 256  }
 0x338   : > { %s1498_s27 = smov 8  }
 0x339   : > { %1255 = dma.vmem_to_hbm [thread:$0]  (%p2272_p9), %s2102_s30, 4096, %s2100_s12, %s882_s0, %s1496_s13, %s1497_s24, %s1498_s27  }
 0x33a PF: > { %s909_s18 = sand.u32 1, %s1476_s14   ;;  %p2273_p4 = scmp.ne.s32.totalorder %s2192_s26, 0 }
 0x33b   : > { %p2274_p0 = scmp.ge.s32.totalorder %s1488_s17, 2  ;;  %s910_s23 = scalar_lea.sflag [#allocation5], %s909_s18 }
 0x33d   : > { %p1266_p5 = pnand %p2274_p0, %p2273_p4 }
 0x33f   : > { %1471 = dma.done.wait (!%p1266_p5), %s910_s23, 4096  }
 0x340   : > { %1473 = vsyncadd (!%p1266_p5), %s910_s23, 4294963200  ;;  %p18_p11 = scmp.ge.s32.totalorder %s1547_s19, 4   ;;  %s2275_s14 = smov %s1480_s15 }
 0x341   : > { %s2276_s15 = smov %s1484_s16  ;;  %s2277_s16 = smov %s1559_s22 }
 0x342   : > { %s2278_s17 = smov %s1547_s19  ;;  %20 = sbr.rel (!%p18_p11) target bundleno = 8 (0x8), region = 82 }
 0x349   :  { %915 = vsyncpa [#allocation4], 1 }
 0x34a   :  { %917 = vsyncpa [#allocation4 + $0x1], 1 }
 0x34b   :  { %918 = vsyncpa [#allocation7], 1 }
 0x34c   :  { %920 = vsyncpa [#allocation7 + $0x1], 1 }
 0x34d   :  { %921 = vsyncpa [#allocation5], 1 }
 0x34e   :  { %923 = vsyncpa [#allocation5 + $0x1], 1 }

// kernel: tpu_custom_call.1
= control target key start
LH: loop header
LB: loop body
LE: loop exit
PB: predicated region body
PF: predicated region fallthrough
CT: control target
= control target key end

     0   :  { %s2149_s0 = inlined_call_operand.<no memory space> [shape: f32[1], index: 0, kind: input, shape index: {}]   ;;  %s2150_s1 = inlined_call_operand.hbm [shape: bf16[256,256], index: 1, kind: input, shape index: {}]   ;;  %s2151_s2 = inlined_call_operand.hbm [shape: f32[256,256], index: 2, kind: input, shape index: {}]   ;;  %s2152_s3 = inlined_call_operand.hbm [shape: f32[256,256], index: 3, kind: output, shape index: {}]  }
   0x1   :  { %8 = sst [smem:[#allocation2]] %s2149_s0 }
   0x2   :  { %9 = vsyncpa [#allocation4], 0 }
   0x3   :  { %10 = vsyncpa [#allocation7], 0 }
   0x4   :  { %12 = vsyncpa [#allocation7 + $0x1], 0 }
   0x5   :  { %13 = vsyncpa [#allocation5], 0 }
   0x6   :  { %15 = vsyncpa [#allocation5 + $0x1], 0  ;;  %s1522_s14 = smov 0   ;;  %s1524_s15 = smov 0  }
   0x7   :  { %s1526_s16 = smov 0   ;;  %s1528_s17 = smov 0  }
   0x8 LB: > { %s1543_s0 = sadd.s32 4294967295, %s1488_s17   ;;  %s979_s18 = sadd.s32 4294967294, %s1488_s17   ;;  %s1488_s17 = sphi %s1528_s17, %s2278_s17   ;;  %s1484_s16 = sphi %s1526_s16, %s2277_s16   ;;  %s1480_s15 = sphi %s1524_s15, %s2276_s15   ;;  %s1476_s14 = sphi %s1522_s14, %s2275_s14  }
   0x9   : > { %s1547_s19 = sadd.s32 1, %s1488_s17   ;;  %s70_s20 = sadd.s32 1, %s1484_s16 }
   0xa   : > { %s67_s21 = ssub.s32 %s1488_s17, %s1547_s19  ;;  %p77_p0 = scmp.ne.s32.totalorder %s1484_s16, %s1480_s15 }
   0xb   : > { %p68_p1 = scmp.eq.s32.totalorder %s67_s21, 0  ;;  %p78_p2 = scmp.eq.s32.totalorder %s1488_s17, 0 }
   0xc   : > { %p83_p3 = scmp.ne.s32.totalorder %s1480_s15, %s1476_s14  ;;  %p2153_p4 = scmp.eq.s32.totalorder %s1543_s0, 0 }
   0xd   : > { %s1559_s22 = scalar_select %p68_p1, %s1484_s16, %s70_s20  }
   0xe   : > { %p1561_p5 = por %p78_p2, %p77_p0  ;;  %p1567_p6 = por %p2153_p4, %p83_p3 }
   0xf   : > { %p107_p7 = scmp.eq.s32.totalorder %s1543_s0, 1  ;;  %p113_p8 = scmp.eq.s32.totalorder %s979_s18, 1 }
  0x10   : > { %s2189_s23 = scalar_select %p1561_p5, 1, 0 }
  0x11   : > { %s2190_s24 = scalar_select %p1567_p6, 1, 0 }
  0x12   : > { %p980_p9 = scmp.ge.s32.totalorder %s1488_s17, 1  ;;  %p120_p10 = scmp.lt.s32.totalorder %s1488_s17, 3 }
  0x13   : > { %p1574_p11 = por %p107_p7, %p77_p0  ;;  %p1578_p12 = por %p113_p8, %p83_p3 }
  0x14   : > { %p1582_p13 = pnand %p980_p9, %p120_p10  ;;  %s1490_s28 = smov [#allocation3]  }
  0x15   : > { %s2191_s25 = scalar_select %p1574_p11, 1, 0 }
  0x16   : > { %s2192_s26 = scalar_select %p1578_p12, 1, 0 }
  0x17   : > { %s2193_s27 = scalar_select %p1582_p13, 1, 0 }
  0x18   : > { %p1257_p1 = pneg %p1582_p13  ;;  %s135_s29 = sshll.u32 %s1490_s28, 4  ;;  %s136_s29 = int_to_ptr.vmem [resolvable:$true] %s135_s29 }
  0x19   : > { %s149_s4 = sand.u32 1, %s1484_s16   ;;  %s1360_s7 = scalar_lea.hbm %s2150_s1, 4096 }
  0x1a   : > { %p1590_p2 = pnand %p1257_p1, %p2153_p4  ;;  %p1361_p7 = scmp.ne.s32.totalorder %s2150_s1, %s1360_s7 }
  0x1b   : > { %p1367_p1 = scmp.lt.u32.totalorder %s1360_s7, %s2150_s1 }
  0x1c   : > { %p1362_p8 = pneg %p1590_p2 }
  0x1e   : > { %p1363_p9 = pnand %p1362_p8, %p1361_p7 }
  0x20   : > { %p1364_p10 = pneg %p1363_p9 }
  0x22   : > { %p1369_p4 = pnand %p1367_p1, %p1364_p10 }
  0x24   : > { %1372 = shalt.err (!%p1369_p4)
}
  0x25   : > { %s1373_s12 = scalar_lea.vmem %s136_s29, 4096  ;;  %p1381_p11 = scmp.lt.s32.totalorder %s136_s29, %s136_s29 }
  0x26   : > { %p1374_p0 = scmp.ne.s32.totalorder %s136_s29, %s1373_s12  ;;  %p1382_p6 = scmp.lt.s32.totalorder %s1373_s12, %s1373_s12 }
  0x28   : > { %p1376_p3 = pnand %p1374_p0, %p1362_p8  ;;  %p1383_p13 = por %p1382_p6, %p1381_p11 }
  0x2a   : > { %p1377_p12 = pneg %p1376_p3 }
  0x2c   : > { %p1384_p5 = pnand %p1383_p13, %p1377_p12 }
  0x2e   : > { %1387 = shalt.err (!%p1384_p5)
}
  0x2f   : > { %s1491_s13 = smov 128   ;;  %s1492_s18 = smov 8  }
  0x30   : > { %1260 = dma.hbm_to_vmem [thread:$0]  (!%p1590_p2), %s2150_s1, 4096, %s136_s29, [#allocation4], %s1491_s13, %s1491_s13, %s1492_s18  }
  0x31   : > { %p2195_p4 = scmp.ne.s32.totalorder %s2189_s23, 0  ;;  %p2196_p0 = scmp.lt.s32.totalorder %s1488_s17, 2 }
  0x32   : > { %s983_s5 = sshll.u32 %s149_s4, 8  ;;  %s984_s6 = sshll.u32 %s1488_s17, 7 }
  0x33   : > { %p1620_p3 = pnand %p2196_p0, %p2195_p4  ;;  %s1628_s30 = scalar_lea.hbm %s2151_s2, %s984_s6 }
  0x34   : > { %s153_s29 = scalar_lea.vmem [#allocation6], %s983_s5  ;;  %s1632_s9 = scalar_lea.sflag [#allocation7], %s149_s4 }
  0x35   : > { %s159_s23 = sshll.u32 %s153_s29, 4  ;;  %s1388_s10 = scalar_lea.hbm %s1628_s30, 4096  ;;  %s1630_s23 = int_to_ptr.vmem [resolvable:$true] %s159_s23 }
  0x36   : > { %p1389_p5 = scmp.ne.s32.totalorder %s1628_s30, %s1388_s10  ;;  %p1390_p6 = pneg %p1620_p3 }
  0x37   : > { %s1393_s20 = scalar_lea.hbm %s2151_s2, 8192  ;;  %p1394_p13 = scmp.lt.u32.totalorder %s1628_s30, %s2151_s2 }
  0x38   : > { %p1391_p11 = pnand %p1390_p6, %p1389_p5  ;;  %p1395_p2 = scmp.lt.u32.totalorder %s1393_s20, %s1388_s10 }
  0x39   : > { %p1397_p8 = scmp.lt.u32.totalorder %s1388_s10, %s1628_s30 }
  0x3a   : > { %p1392_p12 = pneg %p1391_p11  ;;  %p1396_p7 = por %p1395_p2, %p1394_p13 }
  0x3c   : > { %p1398_p9 = por %p1397_p8, %p1396_p7 }
  0x3e   : > { %p1399_p10 = pnand %p1398_p9, %p1392_p12 }
  0x40   : > { %1402 = shalt.err (!%p1399_p10)
}
  0x41   : > { %s1403_s4 = scalar_lea.vmem %s1630_s23, 4096  ;;  %s1493_s5 = smov [#allocation6]  }
  0x42   : > { %p1404_p1 = scmp.ne.s32.totalorder %s1630_s23, %s1403_s4  ;;  %s1408_s7 = sshll.u32 %s1493_s5, 4  ;;  %s1409_s7 = int_to_ptr.vmem [resolvable:$false] %s1408_s7 }
  0x43   : > { %s1410_s8 = scalar_lea.vmem %s1409_s7, 8192  ;;  %p1411_p5 = scmp.lt.s32.totalorder %s1630_s23, %s1409_s7 }
  0x44   : > { %p1406_p4 = pnand %p1404_p1, %p1390_p6  ;;  %p1412_p11 = scmp.lt.s32.totalorder %s1410_s8, %s1403_s4 }
  0x46   : > { %p1407_p0 = pneg %p1406_p4  ;;  %p1413_p13 = por %p1412_p11, %p1411_p5 }
  0x48   : > { %p1414_p2 = pnand %p1413_p13, %p1407_p0 }
  0x4a   : > { %1417 = shalt.err (!%p1414_p2)
}
  0x4b   : > { %s1494_s29 = smov 256   ;;  %p2198_p6 = scmp.ne.s32.totalorder %s2193_s27, 0 }
  0x4c   : > { %1264 = dma.hbm_to_vmem [thread:$0]  (!%p1620_p3), %s1628_s30, 4096, %s1630_s23, %s1632_s9, %s1494_s29, %s1491_s13, %s1492_s18  }
  0x4d   : > { %171 = sbr.rel (%p2198_p6) target bundleno = 826 (0x33a), region = 32 }
  0x54   : > { %p2199_p12 = scmp.eq.s32.totalorder %s1543_s0, 0 }
  0x56   : > { %1463 = dma.done.wait (%p2199_p12), [#allocation4], 4096   ;;  %p2200_p7 = pmov %p2199_p12 }
  0x57   : > { %s1669_s10 = sand.u32 1, %s1480_s15   ;;  %p2201_p3 = scmp.ne.s32.totalorder %s2190_s24, 0 }
  0x58   : > { %1465 = vsyncadd (%p2200_p7), [#allocation4], 4294963200  ;;  %s987_s28 = sshll.u32 %s1669_s10, 8  ;;  %s178_s11 = scalar_lea.sflag [#allocation7], %s1669_s10 }
  0x59   : > { %s1675_s13 = scalar_lea.vmem [#allocation6], %s987_s28 }
  0x5a   : > { %1467 = dma.done.wait (%p2201_p3), %s178_s11, 4096  }
  0x5b   : > { %1469 = vsyncadd (%p2201_p3), %s178_s11, 4294963200  ;;  %v1682_v0 = vld [vmem:[%s1675_s13 + $0x80] sm:$0xff]  ;;  %v1685_v1 = vld [vmem:[%s1675_s13 + $0x88] sm:$0xff]  ;;  %s783_s24 = sld [smem:[#allocation2]]  ;;  %s2003_s27 = scalar_lea.vmem [#allocation8], %s987_s28 }
  0x5c   : > { %2202 = vst [vmem:[#allocation12_spill] sm:$0xff] %v1682_v0  ;;  %2203 = vst [vmem:[#allocation13_spill] sm:$0xff] %v1685_v1  ;;  %v1688_v2 = vld [vmem:[%s1675_s13] sm:$0xff]  ;;  %v277_v3 = vpack.c.bf16 %v1685_v1, %v1682_v0  ;;  %v1693_v4 = vld [vmem:[%s1675_s13 + $0x8] sm:$0xff]  ;;  %s1022_s18 = sshll.u32 %s1543_s0, 7  ;;  %s894_s30 = sshll.u32 %s2003_s27, 4  ;;  %s2102_s30 = int_to_ptr.vmem [resolvable:$true] %s894_s30 }
  0x5d   : > { %2204 = vst [vmem:[#allocation14_spill] sm:$0xff] %v1688_v2  ;;  %2205 = vst [vmem:[#allocation15_spill] sm:$0xff] %v1693_v4  ;;  %v1696_v5 = vld [vmem:[%s1675_s13 + $0x90] sm:$0xff]  ;;  %v1699_v6 = vld [vmem:[%s1675_s13 + $0x98] sm:$0xff]  ;;  %v269_v7 = vpack.c.bf16 %v1693_v4, %v1688_v2  ;;  %s2100_s12 = scalar_lea.hbm %s2152_s3, %s1022_s18  ;;  %s882_s0 = scalar_lea.sflag [#allocation5], %s1669_s10 }
  0x5e   : > { %2206 = vst [vmem:[#allocation16_spill] sm:$0xff] %v1696_v5  ;;  %2207 = vst [vmem:[#allocation17_spill] sm:$0xff] %v1699_v6  ;;  %v278_v8 = vpack.c.bf16 %v1699_v6, %v1696_v5  ;;  %v1706_v9 = vld [vmem:[%s1675_s13 + $0x10] sm:$0xff]  ;;  %v1709_v10 = vld [vmem:[%s1675_s13 + $0x18] sm:$0xff]  ;;  %1025 = vmatprep.subr.bf16.mxu0 %v277_v3  ;;  %s1418_s20 = scalar_lea.vmem %s2102_s30, 4096  ;;  %p2272_p9 = scmp.ne.s32.totalorder %s2191_s25, 0 }
  0x5f   : > { %2208 = vst [vmem:[#allocation18_spill] sm:$0xff] %v1706_v9  ;;  %2209 = vst [vmem:[#allocation19_spill] sm:$0xff] %v1709_v10  ;;  %v1712_v11 = vld [vmem:[%s1675_s13 + $0xa0] sm:$0xff]  ;;  %v1715_v12 = vld [vmem:[%s1675_s13 + $0xa8] sm:$0xff]  ;;  %1026 = vmatpush3.bf16.msra.mxu0 %v269_v7  ;;  %v270_v13 = vpack.c.bf16 %v1709_v10, %v1706_v9  ;;  %p1419_p8 = scmp.ne.s32.totalorder %s2102_s30, %s1418_s20  ;;  %s1495_s21 = smov [#allocation8]  }
  0x60   : > { %2210 = vst [vmem:[#allocation20_spill] sm:$0xff] %v1712_v11  ;;  %2211 = vst [vmem:[#allocation21_spill] sm:$0xff] %v1715_v12  ;;  %1027 = vmatprep.subr.bf16.mxu0 %v278_v8  ;;  %v279_v14 = vpack.c.bf16 %v1715_v12, %v1712_v11  ;;  %v1722_v15 = vld [vmem:[%s1675_s13 + $0x20] sm:$0xff]  ;;  %v1725_v16 = vld [vmem:[%s1675_s13 + $0x28] sm:$0xff]  ;;  %s1422_s6 = sshll.u32 %s1495_s21, 4  ;;  %s1423_s6 = int_to_ptr.vmem [resolvable:$false] %s1422_s6 }
  0x61   : > { %2212 = vst [vmem:[#allocation22_spill] sm:$0xff] %v1722_v15  ;;  %2213 = vst [vmem:[#allocation23_spill] sm:$0xff] %v1725_v16  ;;  %v1728_v17 = vld [vmem:[%s1675_s13 + $0xb0] sm:$0xff]  ;;  %v1731_v18 = vld [vmem:[%s1675_s13 + $0xb8] sm:$0xff]  ;;  %v271_v19 = vpack.c.bf16 %v1725_v16, %v1722_v15  ;;  %p1420_p10 = pnand %p1419_p8, %p2272_p9  ;;  %s1424_s4 = scalar_lea.vmem %s1423_s6, 8192 }
  0x62   : > { %2214 = vst [vmem:[#allocation24_spill] sm:$0xff] %v1728_v17  ;;  %2215 = vst [vmem:[#allocation25_spill] sm:$0xff] %v1731_v18  ;;  %v280_v20 = vpack.c.bf16 %v1731_v18, %v1728_v17  ;;  %v1738_v21 = vld [vmem:[%s1675_s13 + $0x30] sm:$0xff]  ;;  %v1741_v22 = vld [vmem:[%s1675_s13 + $0x38] sm:$0xff]  ;;  %p1425_p4 = scmp.lt.s32.totalorder %s2102_s30, %s1423_s6  ;;  %p1426_p0 = scmp.lt.s32.totalorder %s1424_s4, %s1418_s20 }
  0x63   : > { %1028 = vmatpush3.bf16.msra.mxu0 %v270_v13  ;;  %2216 = vst [vmem:[#allocation26_spill] sm:$0xff] %v1738_v21  ;;  %2217 = vst [vmem:[#allocation27_spill] sm:$0xff] %v1741_v22  ;;  %v1744_v23 = vld [vmem:[%s1675_s13 + $0xc0] sm:$0xff]  ;;  %v1747_v24 = vld [vmem:[%s1675_s13 + $0xc8] sm:$0xff]  ;;  %v272_v26 = vpack.c.bf16 %v1741_v22, %v1738_v21  ;;  %p1421_p1 = pneg %p1420_p10 }
  0x64   : > { %1029 = vmatprep.subr.bf16.mxu0 %v279_v14  ;;  %2218 = vst [vmem:[#allocation28_spill] sm:$0xff] %v1744_v23  ;;  %2219 = vst [vmem:[#allocation29_spill] sm:$0xff] %v1747_v24  ;;  %v1314_v25 = vld [vmem:[#allocation3 + $0x4] ss:$8 sps:$4 sm:$0xff]   ;;  %v281_v28 = vpack.c.bf16 %v1747_v24, %v1744_v23  ;;  %v1760_v30 = vld [vmem:[%s1675_s13 + $0xd0] sm:$0xff]  ;;  %p1427_p5 = por %p1426_p0, %p1425_p4 }
  0x65   : > { %v1752_v27 = vld [vmem:[%s1675_s13 + $0x40] sm:$0xff]  ;;  %v1757_v29 = vld [vmem:[%s1675_s13 + $0x48] sm:$0xff]  ;;  %477 = vmatprep.mubr.bf16.mxu0 %v1314_v25  ;;  %2222 = vst [vmem:[#allocation32_spill] sm:$0xff] %v1760_v30  ;;  %v1763_v31 = vld [vmem:[%s1675_s13 + $0xd8] sm:$0xff]  ;;  %654 = vmatprep.mubr.bf16.mxu1 %v1314_v25 }
  0x66   : > { %2220 = vst [vmem:[#allocation30_spill] sm:$0xff] %v1752_v27  ;;  %2221 = vst [vmem:[#allocation31_spill] sm:$0xff] %v1757_v29  ;;  %v273_v32 = vpack.c.bf16 %v1757_v29, %v1752_v27  ;;  %v1768_v33 = vld [vmem:[%s1675_s13 + $0x50] sm:$0xff]  ;;  %v282_v34 = vpack.c.bf16 %v1763_v31, %v1760_v30  ;;  %v1773_v35 = vld [vmem:[%s1675_s13 + $0x58] sm:$0xff]  ;;  %p1428_p11 = pnand %p1427_p5, %p1421_p1 }
  0x67   : > { %1030 = vmatpush3.bf16.msra.mxu0 %v271_v19  ;;  %2223 = vst [vmem:[#allocation33_spill] sm:$0xff] %v1763_v31  ;;  %2224 = vst [vmem:[#allocation34_spill] sm:$0xff] %v1768_v33  ;;  %v1776_v36 = vld [vmem:[%s1675_s13 + $0xe0] sm:$0xff]  ;;  %v1779_v37 = vld [vmem:[%s1675_s13 + $0xe8] sm:$0xff]  ;;  %v274_v38 = vpack.c.bf16 %v1773_v35, %v1768_v33 }
  0x68   : > { %1031 = vmatprep.subr.bf16.mxu0 %v280_v20  ;;  %2225 = vst [vmem:[#allocation35_spill] sm:$0xff] %v1773_v35  ;;  %2226 = vst [vmem:[#allocation36_spill] sm:$0xff] %v1776_v36  ;;  %v1784_v39 = vld [vmem:[%s1675_s13 + $0x60] sm:$0xff]  ;;  %v283_v40 = vpack.c.bf16 %v1779_v37, %v1776_v36  ;;  %v1789_v41 = vld [vmem:[%s1675_s13 + $0x68] sm:$0xff] }
  0x69   : > { %2227 = vst [vmem:[#allocation37_spill] sm:$0xff] %v1779_v37  ;;  %2228 = vst [vmem:[#allocation38_spill] sm:$0xff] %v1784_v39  ;;  %v1792_v42 = vld [vmem:[%s1675_s13 + $0xf0] sm:$0xff]  ;;  %v1795_v43 = vld [vmem:[%s1675_s13 + $0xf8] sm:$0xff]  ;;  %v275_v44 = vpack.c.bf16 %v1789_v41, %v1784_v39 }
  0x6a   : > { %2229 = vst [vmem:[#allocation39_spill] sm:$0xff] %v1789_v41  ;;  %2230 = vst [vmem:[#allocation40_spill] sm:$0xff] %v1792_v42  ;;  %v1800_v45 = vld [vmem:[%s1675_s13 + $0x70] sm:$0xff]  ;;  %v284_v46 = vpack.c.bf16 %v1795_v43, %v1792_v42  ;;  %v1805_v47 = vld [vmem:[%s1675_s13 + $0x78] sm:$0xff] }
  0x6b   : > { %1032 = vmatpush3.bf16.msra.mxu0 %v272_v26  ;;  %2231 = vst [vmem:[#allocation41_spill] sm:$0xff] %v1795_v43  ;;  %2232 = vst [vmem:[#allocation42_spill] sm:$0xff] %v1800_v45  ;;  %v276_v48 = vpack.c.bf16 %v1805_v47, %v1800_v45  ;;  %v1809_v49 = vld [vmem:[#allocation3] ss:$8 sps:$4 sm:$0xff]   ;;  %v1811_v50 = vld [vmem:[#allocation3 + $0x14] ss:$8 sps:$4 sm:$0xff]  }
  0x6c   : > { %1033 = vmatprep.subr.bf16.mxu0 %v281_v28  ;;  %2233 = vst [vmem:[#allocation43_spill] sm:$0xff] %v1805_v47  ;;  %v1815_v51 = vld [vmem:[#allocation3 + $0x10] ss:$8 sps:$4 sm:$0xff]   ;;  %v1817_v52 = vld [vmem:[#allocation3 + $0x24] ss:$8 sps:$4 sm:$0xff]  }
  0x6d   : > { %v1821_v53 = vld [vmem:[#allocation3 + $0x20] ss:$8 sps:$4 sm:$0xff]   ;;  %v1823_v54 = vld [vmem:[#allocation3 + $0x34] ss:$8 sps:$4 sm:$0xff]   ;;  %v1827_v55 = vld [vmem:[#allocation3 + $0x30] ss:$8 sps:$4 sm:$0xff]  }
  0x6e   : > { %v1829_v56 = vld [vmem:[#allocation3 + $0x44] ss:$8 sps:$4 sm:$0xff]   ;;  %v1833_v57 = vld [vmem:[#allocation3 + $0x40] ss:$8 sps:$4 sm:$0xff]   ;;  %v1835_v58 = vld [vmem:[#allocation3 + $0x54] ss:$8 sps:$4 sm:$0xff]  }
  0x6f   : > { %1034 = vmatpush3.bf16.msra.mxu0 %v273_v32  ;;  %v1839_v59 = vld [vmem:[#allocation3 + $0x50] ss:$8 sps:$4 sm:$0xff]   ;;  %v1841_v60 = vld [vmem:[#allocation3 + $0x64] ss:$8 sps:$4 sm:$0xff]   ;;  %v1845_v61 = vld [vmem:[#allocation3 + $0x60] ss:$8 sps:$4 sm:$0xff]  }
  0x70   : > { %1035 = vmatprep.subr.bf16.mxu0 %v282_v34  ;;  %v1847_v62 = vld [vmem:[#allocation3 + $0x74] ss:$8 sps:$4 sm:$0xff]   ;;  %v1851_v63 = vld [vmem:[#allocation3 + $0x70] ss:$8 sps:$4 sm:$0xff]   ;;  %v1853_v3 = vld [vmem:[#allocation3 + $0x84] ss:$8 sps:$4 sm:$0xff]  }
  0x71   : > { %v1857_v7 = vld [vmem:[#allocation3 + $0x80] ss:$8 sps:$4 sm:$0xff]   ;;  %v1859_v8 = vld [vmem:[#allocation3 + $0x94] ss:$8 sps:$4 sm:$0xff]   ;;  %v1863_v13 = vld [vmem:[#allocation3 + $0x90] ss:$8 sps:$4 sm:$0xff]  }
  0x72   : > { %v1865_v14 = vld [vmem:[#allocation3 + $0xa4] ss:$8 sps:$4 sm:$0xff]   ;;  %v1869_v19 = vld [vmem:[#allocation3 + $0xa0] ss:$8 sps:$4 sm:$0xff]   ;;  %v1871_v20 = vld [vmem:[#allocation3 + $0xb4] ss:$8 sps:$4 sm:$0xff]  }
  0x73   : > { %1036 = vmatpush3.bf16.msra.mxu0 %v274_v38  ;;  %v1875_v25 = vld [vmem:[#allocation3 + $0xb0] ss:$8 sps:$4 sm:$0xff]   ;;  %v1877_v26 = vld [vmem:[#allocation3 + $0xc4] ss:$8 sps:$4 sm:$0xff]   ;;  %v1881_v28 = vld [vmem:[#allocation3 + $0xc0] ss:$8 sps:$4 sm:$0xff]  }
  0x74   : > { %1037 = vmatprep.subr.bf16.mxu0 %v283_v40  ;;  %v1883_v32 = vld [vmem:[#allocation3 + $0xd4] ss:$8 sps:$4 sm:$0xff]   ;;  %v1887_v34 = vld [vmem:[#allocation3 + $0xd0] ss:$8 sps:$4 sm:$0xff]   ;;  %v1889_v38 = vld [vmem:[#allocation3 + $0xe4] ss:$8 sps:$4 sm:$0xff]  }
  0x75   : > { %v1893_v40 = vld [vmem:[#allocation3 + $0xe0] ss:$8 sps:$4 sm:$0xff]  }
  0x77   : > { %1038 = vmatpush3.bf16.msra.mxu0 %v275_v44  ;;  %v1895_v44 = vld [vmem:[#allocation3 + $0xf4] ss:$8 sps:$4 sm:$0xff]  }
  0x78   : > { %1039 = vmatprep.subr.bf16.mxu0 %v284_v46  ;;  %v1899_v46 = vld [vmem:[#allocation3 + $0xf0] ss:$8 sps:$4 sm:$0xff]  }
  0x7b   : > { %1040 = vmatpush3.bf16.msra.mxu0 %v276_v48 }
  0x7e   : > { %478 = vmatmul.mubr.bf16.vlgmr.msra.gmra.mrb[0].mxu0 %v1809_v49 }
  0x7f   : > { %485 = vmatprep.mubr.bf16.mxu0 %v1811_v50 }
  0x86   : > { %486 = vmatmul.mubr.bf16.gmra.mrb[4].mxu0 %v1815_v51 }
  0x87   : > { %493 = vmatprep.mubr.bf16.mxu0 %v1817_v52 }
  0x8e   : > { %494 = vmatmul.mubr.bf16.gmra.mrb[8].mxu0 %v1821_v53 }
  0x8f   : > { %501 = vmatprep.mubr.bf16.mxu0 %v1823_v54 }
  0x96   : > { %502 = vmatmul.mubr.bf16.gmra.mrb[12].mxu0 %v1827_v55 }
  0x97   : > { %509 = vmatprep.mubr.bf16.mxu0 %v1829_v56 }
  0x9e   : > { %510 = vmatmul.mubr.bf16.gmra.mrb[16].mxu0 %v1833_v57 }
  0x9f   : > { %517 = vmatprep.mubr.bf16.mxu0 %v1835_v58 }
  0xa6   : > { %518 = vmatmul.mubr.bf16.gmra.mrb[20].mxu0 %v1839_v59 }
  0xa7   : > { %525 = vmatprep.mubr.bf16.mxu0 %v1841_v60 }
  0xae   : > { %526 = vmatmul.mubr.bf16.gmra.mrb[24].mxu0 %v1845_v61 }
  0xaf   : > { %533 = vmatprep.mubr.bf16.mxu0 %v1847_v62 }
  0xb6   : > { %534 = vmatmul.mubr.bf16.gmra.mrb[28].mxu0 %v1851_v63 }
  0xb7   : > { %541 = vmatprep.mubr.bf16.mxu0 %v1853_v3 }
  0xbe   : > { %542 = vmatmul.mubr.bf16.gmra.mrb[32].mxu0 %v1857_v7 }
  0xbf   : > { %549 = vmatprep.mubr.bf16.mxu0 %v1859_v8 }
  0xc6   : > { %550 = vmatmul.mubr.bf16.gmra.mrb[36].mxu0 %v1863_v13 }
  0xc7   : > { %557 = vmatprep.mubr.bf16.mxu0 %v1865_v14 }
  0xce   : > { %558 = vmatmul.mubr.bf16.gmra.mrb[40].mxu0 %v1869_v19 }
  0xcf   : > { %565 = vmatprep.mubr.bf16.mxu0 %v1871_v20 }
  0xd6   : > { %566 = vmatmul.mubr.bf16.gmra.mrb[44].mxu0 %v1875_v25 }
  0xd7   : > { %573 = vmatprep.mubr.bf16.mxu0 %v1877_v26 }
  0xde   : > { %574 = vmatmul.mubr.bf16.gmra.mrb[48].mxu0 %v1881_v28 }
  0xdf   : > { %581 = vmatprep.mubr.bf16.mxu0 %v1883_v32 }
  0xe6   : > { %582 = vmatmul.mubr.bf16.gmra.mrb[52].mxu0 %v1887_v34 }
  0xe7   : > { %589 = vmatprep.mubr.bf16.mxu0 %v1889_v38 }
  0xee   : > { %590 = vmatmul.mubr.bf16.gmra.mrb[56].mxu0 %v1893_v40 }
  0xef   : > { %597 = vmatprep.mubr.bf16.mxu0 %v1895_v44 }
  0xf6   : > { %598 = vmatmul.mubr.bf16.gmra.mrb[60].mxu0 %v1899_v46 }
 0x151   : > { %v1041_v48 = vpop.f32.mrb[0].mxu0 }
 0x152   : > { %v1042_v43 = vpop.f32.mrb[1].mxu0 }
 0x153   : > { %v1902_v42 = vadd.f32 %v1042_v43, %v1041_v48  ;;  %v1044_v37 = vpop.f32.mrb[2].mxu0 }
 0x154   : > { %v1045_v36 = vpop.f32.mrb[3].mxu0 }
 0x155   : > { %v1046_v31 = vadd.f32 %v1045_v36, %v1044_v37 }
 0x157   : > { %v606_v30 = vpack.c.bf16 %v1046_v31, %v1902_v42 }
 0x159   : > { %v1047_v24 = vpop.f32.mrb[4].mxu0 }
 0x15a   : > { %v1048_v23 = vpop.f32.mrb[5].mxu0 }
 0x15b   : > { %v1905_v18 = vadd.f32 %v1048_v23, %v1047_v24  ;;  %v1050_v17 = vpop.f32.mrb[6].mxu0 }
 0x15c   : > { %v1051_v12 = vpop.f32.mrb[7].mxu0 }
 0x15d   : > { %v1907_v11 = vadd.f32 %v1051_v12, %v1050_v17 }
 0x15f   : > { %v607_v6 = vpack.c.bf16 %v1907_v11, %v1905_v18 }
 0x161   : > { %v1053_v5 = vpop.f32.mrb[8].mxu0 }
 0x162   : > { %v1054_v1 = vpop.f32.mrb[9].mxu0 }
 0x163   : > { %v1911_v43 = vadd.f32 %v1054_v1, %v1053_v5  ;;  %v1056_v48 = vpop.f32.mrb[10].mxu0 }
 0x164   : > { %v1057_v0 = vpop.f32.mrb[11].mxu0 }
 0x165   : > { %v1913_v36 = vadd.f32 %v1057_v0, %v1056_v48 }
 0x169   : > { %v1059_v23 = vpop.f32.mrb[12].mxu0 }
 0x16a   : > { %v1060_v24 = vpop.f32.mrb[13].mxu0 }
 0x16b   : > { %v1917_v37 = vadd.f32 %v1060_v24, %v1059_v23  ;;  %v1062_v12 = vpop.f32.mrb[14].mxu0 }
 0x16c   : > { %v1063_v17 = vpop.f32.mrb[15].mxu0 }
 0x16d   : > { %v1919_v42 = vadd.f32 %v1063_v17, %v1062_v12 }
 0x171   : > { %v1065_v1 = vpop.f32.mrb[16].mxu0 }
 0x172   : > { %v1066_v5 = vpop.f32.mrb[17].mxu0 }
 0x173   : > { %v1923_v18 = vadd.f32 %v1066_v5, %v1065_v1  ;;  %v1068_v0 = vpop.f32.mrb[18].mxu0 }
 0x174   : > { %v1069_v48 = vpop.f32.mrb[19].mxu0 }
 0x175   : > { %v1925_v47 = vadd.f32 %v1069_v48, %v1068_v0 }
 0x179   : > { %v1071_v23 = vpop.f32.mrb[20].mxu0 }
 0x17a   : > { %v1072_v24 = vpop.f32.mrb[21].mxu0 }
 0x17b   : > { %v1929_v45 = vadd.f32 %v1072_v24, %v1071_v23  ;;  %v1074_v12 = vpop.f32.mrb[22].mxu0 }
 0x17c   : > { %v1075_v17 = vpop.f32.mrb[23].mxu0 }
 0x17d   : > { %v1931_v41 = vadd.f32 %v1075_v17, %v1074_v12 }
 0x181   : > { %v1077_v1 = vpop.f32.mrb[24].mxu0 }
 0x182   : > { %v1078_v5 = vpop.f32.mrb[25].mxu0 }
 0x183   : > { %v1935_v39 = vadd.f32 %v1078_v5, %v1077_v1  ;;  %v1080_v0 = vpop.f32.mrb[26].mxu0 }
 0x184   : > { %v1081_v48 = vpop.f32.mrb[27].mxu0 }
 0x185   : > { %v1937_v35 = vadd.f32 %v1081_v48, %v1080_v0 }
 0x189   : > { %v1083_v23 = vpop.f32.mrb[28].mxu0 }
 0x18a   : > { %v1084_v24 = vpop.f32.mrb[29].mxu0 }
 0x18b   : > { %v1941_v33 = vadd.f32 %v1084_v24, %v1083_v23  ;;  %v1086_v12 = vpop.f32.mrb[30].mxu0 }
 0x18c   : > { %v1087_v17 = vpop.f32.mrb[31].mxu0 }
 0x18d   : > { %v1943_v29 = vadd.f32 %v1087_v17, %v1086_v12 }
 0x191   : > { %v1089_v1 = vpop.f32.mrb[32].mxu0 }
 0x192   : > { %v1090_v5 = vpop.f32.mrb[33].mxu0 }
 0x193   : > { %v1091_v27 = vadd.f32 %v1090_v5, %v1089_v1  ;;  %v1092_v22 = vpop.f32.mrb[34].mxu0 }
 0x194   : > { %v1093_v0 = vpop.f32.mrb[35].mxu0 }
 0x195   : > { %v1094_v48 = vadd.f32 %v1093_v0, %v1092_v22 }
 0x197   : > { %v614_v21 = vpack.c.bf16 %v1094_v48, %v1091_v27 }
 0x199   : > { %v1095_v16 = vpop.f32.mrb[36].mxu0  ;;  %1137 = vmatprep.subr.bf16.mxu1 %v614_v21  ;;  %v2234_v21 = vpack.c.bf16 %v1913_v36, %v1911_v43  ;;  %v2236_v36 = vpack.c.bf16 %v1925_v47, %v1923_v18  ;;  %v2238_v18 = vpack.c.bf16 %v1937_v35, %v1935_v39  ;;  %v1996_v35 = vstv %s783_s24 }
 0x19a   : > { %v1096_v31 = vpop.f32.mrb[37].mxu0  ;;  %1138 = vmatpush3.bf16.msra.mxu1 %v606_v30 }
 0x19b   : > { %v1097_v23 = vadd.f32 %v1096_v31, %v1095_v16  ;;  %v1098_v24 = vpop.f32.mrb[38].mxu0 }
 0x19c   : > { %v1099_v15 = vpop.f32.mrb[39].mxu0 }
 0x19d   : > { %v1100_v10 = vadd.f32 %v1099_v15, %v1098_v24 }
 0x19f   : > { %v615_v12 = vpack.c.bf16 %v1100_v10, %v1097_v23 }
 0x1a1   : > { %v1101_v17 = vpop.f32.mrb[40].mxu0  ;;  %1139 = vmatprep.subr.bf16.mxu1 %v615_v12 }
 0x1a2   : > { %v1102_v9 = vpop.f32.mrb[41].mxu0  ;;  %1140 = vmatpush3.bf16.msra.mxu1 %v607_v6 }
 0x1a3   : > { %v1103_v11 = vadd.f32 %v1102_v9, %v1101_v17  ;;  %v1104_v4 = vpop.f32.mrb[42].mxu0  ;;  %v2235_v9 = vpack.c.bf16 %v1919_v42, %v1917_v37  ;;  %v2237_v42 = vpack.c.bf16 %v1931_v41, %v1929_v45  ;;  %v2239_v41 = vpack.c.bf16 %v1943_v29, %v1941_v33 }
 0x1a4   : > { %v1105_v1 = vpop.f32.mrb[43].mxu0 }
 0x1a5   : > { %v1106_v5 = vadd.f32 %v1105_v1, %v1104_v4 }
 0x1a7   : > { %v616_v2 = vpack.c.bf16 %v1106_v5, %v1103_v11 }
 0x1a9   : > { %v1107_v22 = vpop.f32.mrb[44].mxu0  ;;  %1141 = vmatprep.subr.bf16.mxu1 %v616_v2 }
 0x1aa   : > { %v1108_v27 = vpop.f32.mrb[45].mxu0  ;;  %1142 = vmatpush3.bf16.msra.mxu1 %v2234_v21 }
 0x1ab   : > { %v1109_v16 = vadd.f32 %v1108_v27, %v1107_v22  ;;  %v1110_v30 = vpop.f32.mrb[46].mxu0 }
 0x1ac   : > { %v1111_v15 = vpop.f32.mrb[47].mxu0 }
 0x1ad   : > { %v1112_v10 = vadd.f32 %v1111_v15, %v1110_v30 }
 0x1af   : > { %v617_v31 = vpack.c.bf16 %v1112_v10, %v1109_v16 }
 0x1b1   : > { %v1113_v0 = vpop.f32.mrb[48].mxu0  ;;  %1143 = vmatprep.subr.bf16.mxu1 %v617_v31 }
 0x1b2   : > { %v1114_v6 = vpop.f32.mrb[49].mxu0  ;;  %1144 = vmatpush3.bf16.msra.mxu1 %v2235_v9 }
 0x1b3   : > { %v1115_v4 = vadd.f32 %v1114_v6, %v1113_v0  ;;  %v1116_v11 = vpop.f32.mrb[50].mxu0 }
 0x1b4   : > { %v1117_v2 = vpop.f32.mrb[51].mxu0 }
 0x1b5   : > { %v1118_v48 = vadd.f32 %v1117_v2, %v1116_v11 }
 0x1b7   : > { %v618_v23 = vpack.c.bf16 %v1118_v48, %v1115_v4 }
 0x1b9   : > { %v1119_v24 = vpop.f32.mrb[52].mxu0  ;;  %1145 = vmatprep.subr.bf16.mxu1 %v618_v23 }
 0x1ba   : > { %v1120_v43 = vpop.f32.mrb[53].mxu0  ;;  %1146 = vmatpush3.bf16.msra.mxu1 %v2236_v36 }
 0x1bb   : > { %v1121_v12 = vadd.f32 %v1120_v43, %v1119_v24  ;;  %v1122_v17 = vpop.f32.mrb[54].mxu0 }
 0x1bc   : > { %v1123_v1 = vpop.f32.mrb[55].mxu0 }
 0x1bd   : > { %v1124_v5 = vadd.f32 %v1123_v1, %v1122_v17  ;;  %v2246_v1 = vld [vmem:[#allocation26_spill] sm:$0xff] }
 0x1bf   : > { %v619_v22 = vpack.c.bf16 %v1124_v5, %v1121_v12 }
 0x1c1   : > { %v1125_v27 = vpop.f32.mrb[56].mxu0  ;;  %1147 = vmatprep.subr.bf16.mxu1 %v619_v22 }
 0x1c2   : > { %v1126_v37 = vpop.f32.mrb[57].mxu0  ;;  %1148 = vmatpush3.bf16.msra.mxu1 %v2237_v42 }
 0x1c3   : > { %v1127_v21 = vadd.f32 %v1126_v37, %v1125_v27  ;;  %v1128_v16 = vpop.f32.mrb[58].mxu0  ;;  %v2247_v27 = vld [vmem:[#allocation27_spill] sm:$0xff] }
 0x1c4   : > { %v1129_v30 = vpop.f32.mrb[59].mxu0 }
 0x1c5   : > { %v1130_v15 = vadd.f32 %v1129_v30, %v1128_v16 }
 0x1c7   : > { %v620_v10 = vpack.c.bf16 %v1130_v15, %v1127_v21 }
 0x1c9   : > { %v1131_v31 = vpop.f32.mrb[60].mxu0  ;;  %1149 = vmatprep.subr.bf16.mxu1 %v620_v10 }
 0x1ca   : > { %v1132_v47 = vpop.f32.mrb[61].mxu0  ;;  %1150 = vmatpush3.bf16.msra.mxu1 %v2238_v18 }
 0x1cb   : > { %v1133_v0 = vadd.f32 %v1132_v47, %v1131_v31  ;;  %v1134_v6 = vpop.f32.mrb[62].mxu0  ;;  %v2248_v47 = vld [vmem:[#allocation30_spill] sm:$0xff] }
 0x1cc   : > { %v1135_v9 = vpop.f32.mrb[63].mxu0 }
 0x1cd   : > { %v1136_v4 = vadd.f32 %v1135_v9, %v1134_v6  ;;  %v2249_v6 = vld [vmem:[#allocation31_spill] sm:$0xff] }
 0x1cf   : > { %v621_v11 = vpack.c.bf16 %v1136_v4, %v1133_v0 }
 0x1d1   : > { %1151 = vmatprep.subr.bf16.mxu1 %v621_v11 }
 0x1d2   : > { %1152 = vmatpush3.bf16.msra.mxu1 %v2239_v41 }
 0x1d5   : > { %655 = vmatmul.mubr.bf16.vlgmr.msra.gmra.mrb[0].mxu1 %v1809_v49 }
 0x1d6   : > { %662 = vmatprep.mubr.bf16.mxu1 %v1811_v50 }
 0x1dd   : > { %663 = vmatmul.mubr.bf16.gmra.mrb[4].mxu1 %v1815_v51 }
 0x1de   : > { %670 = vmatprep.mubr.bf16.mxu1 %v1817_v52  ;;  %v2240_v52 = vld [vmem:[#allocation14_spill] sm:$0xff] }
 0x1e5   : > { %671 = vmatmul.mubr.bf16.gmra.mrb[8].mxu1 %v1821_v53 }
 0x1e6   : > { %678 = vmatprep.mubr.bf16.mxu1 %v1823_v54 }
 0x1ed   : > { %679 = vmatmul.mubr.bf16.gmra.mrb[12].mxu1 %v1827_v55  ;;  %v2241_v55 = vld [vmem:[#allocation15_spill] sm:$0xff] }
 0x1ee   : > { %686 = vmatprep.mubr.bf16.mxu1 %v1829_v56 }
 0x1f5   : > { %687 = vmatmul.mubr.bf16.gmra.mrb[16].mxu1 %v1833_v57 }
 0x1f6   : > { %694 = vmatprep.mubr.bf16.mxu1 %v1835_v58 }
 0x1fd   : > { %695 = vmatmul.mubr.bf16.gmra.mrb[20].mxu1 %v1839_v59 }
 0x1fe   : > { %702 = vmatprep.mubr.bf16.mxu1 %v1841_v60 }
 0x205   : > { %703 = vmatmul.mubr.bf16.gmra.mrb[24].mxu1 %v1845_v61 }
 0x206   : > { %710 = vmatprep.mubr.bf16.mxu1 %v1847_v62 }
 0x20d   : > { %711 = vmatmul.mubr.bf16.gmra.mrb[28].mxu1 %v1851_v63 }
 0x20e   : > { %718 = vmatprep.mubr.bf16.mxu1 %v1853_v3  ;;  %v2242_v3 = vld [vmem:[#allocation18_spill] sm:$0xff] }
 0x215   : > { %719 = vmatmul.mubr.bf16.gmra.mrb[32].mxu1 %v1857_v7 }
 0x216   : > { %726 = vmatprep.mubr.bf16.mxu1 %v1859_v8 }
 0x21d   : > { %727 = vmatmul.mubr.bf16.gmra.mrb[36].mxu1 %v1863_v13  ;;  %v2243_v13 = vld [vmem:[#allocation19_spill] sm:$0xff] }
 0x21e   : > { %734 = vmatprep.mubr.bf16.mxu1 %v1865_v14 }
 0x225   : > { %735 = vmatmul.mubr.bf16.gmra.mrb[40].mxu1 %v1869_v19 }
 0x226   : > { %742 = vmatprep.mubr.bf16.mxu1 %v1871_v20 }
 0x22d   : > { %743 = vmatmul.mubr.bf16.gmra.mrb[44].mxu1 %v1875_v25 }
 0x22e   : > { %750 = vmatprep.mubr.bf16.mxu1 %v1877_v26 }
 0x235   : > { %751 = vmatmul.mubr.bf16.gmra.mrb[48].mxu1 %v1881_v28 }
 0x236   : > { %758 = vmatprep.mubr.bf16.mxu1 %v1883_v32 }
 0x23d   : > { %759 = vmatmul.mubr.bf16.gmra.mrb[52].mxu1 %v1887_v34 }
 0x23e   : > { %766 = vmatprep.mubr.bf16.mxu1 %v1889_v38  ;;  %v2244_v38 = vld [vmem:[#allocation22_spill] sm:$0xff] }
 0x245   : > { %767 = vmatmul.mubr.bf16.gmra.mrb[56].mxu1 %v1893_v40 }
 0x246   : > { %774 = vmatprep.mubr.bf16.mxu1 %v1895_v44 }
 0x24d   : > { %775 = vmatmul.mubr.bf16.gmra.mrb[60].mxu1 %v1899_v46  ;;  %v2245_v46 = vld [vmem:[#allocation23_spill] sm:$0xff] }
 0x2a8   : > { %v1153_v29 = vpop.f32.mrb[0].mxu1 }
 0x2a9   : > { %v1154_v33 = vpop.f32.mrb[1].mxu1 }
 0x2aa   : > { %v1155_v39 = vadd.f32 %v1154_v33, %v1153_v29  ;;  %v1156_v45 = vpop.f32.mrb[2].mxu1 }
 0x2ab   : > { %v1157_v49 = vpop.f32.mrb[3].mxu1 }
 0x2ac   : > { %v785_v50 = vmul.f32 %v1155_v39, %v1996_v35  ;;  %v1158_v51 = vadd.f32 %v1157_v49, %v1156_v45  ;;  %v2250_v49 = vld [vmem:[#allocation34_spill] sm:$0xff] }
 0x2ae   : > { %v817_v53 = vsub.f32 %v785_v50, %v2240_v52  ;;  %v786_v54 = vmul.f32 %v1158_v51, %v1996_v35  ;;  %v2251_v52 = vld [vmem:[#allocation35_spill] sm:$0xff] }
 0x2b0   : > { %849 = vst [vmem:[%s2003_s27] sm:$0xff] %v817_v53  ;;  %v818_v56 = vsub.f32 %v786_v54, %v2241_v55  ;;  %v1159_v57 = vpop.f32.mrb[4].mxu1 }
 0x2b1   : > { %v1160_v58 = vpop.f32.mrb[5].mxu1 }
 0x2b2   : > { %850 = vst [vmem:[%s2003_s27 + $0x8] sm:$0xff] %v818_v56  ;;  %v1161_v59 = vadd.f32 %v1160_v58, %v1159_v57  ;;  %v1162_v60 = vpop.f32.mrb[6].mxu1 }
 0x2b3   : > { %v1163_v61 = vpop.f32.mrb[7].mxu1 }
 0x2b4   : > { %v787_v62 = vmul.f32 %v1161_v59, %v1996_v35  ;;  %v1164_v63 = vadd.f32 %v1163_v61, %v1162_v60  ;;  %v2252_v61 = vld [vmem:[#allocation38_spill] sm:$0xff] }
 0x2b6   : > { %v819_v7 = vsub.f32 %v787_v62, %v2242_v3  ;;  %v788_v8 = vmul.f32 %v1164_v63, %v1996_v35  ;;  %v2253_v3 = vld [vmem:[#allocation39_spill] sm:$0xff] }
 0x2b8   : > { %851 = vst [vmem:[%s2003_s27 + $0x10] sm:$0xff] %v819_v7  ;;  %v820_v14 = vsub.f32 %v788_v8, %v2243_v13  ;;  %v1165_v19 = vpop.f32.mrb[8].mxu1 }
 0x2b9   : > { %v1166_v20 = vpop.f32.mrb[9].mxu1 }
 0x2ba   : > { %852 = vst [vmem:[%s2003_s27 + $0x18] sm:$0xff] %v820_v14  ;;  %v1167_v25 = vadd.f32 %v1166_v20, %v1165_v19  ;;  %v1168_v26 = vpop.f32.mrb[10].mxu1 }
 0x2bb   : > { %v1169_v28 = vpop.f32.mrb[11].mxu1 }
 0x2bc   : > { %v789_v32 = vmul.f32 %v1167_v25, %v1996_v35  ;;  %v1170_v34 = vadd.f32 %v1169_v28, %v1168_v26  ;;  %v2254_v28 = vld [vmem:[#allocation42_spill] sm:$0xff] }
 0x2be   : > { %v821_v40 = vsub.f32 %v789_v32, %v2244_v38  ;;  %v790_v44 = vmul.f32 %v1170_v34, %v1996_v35  ;;  %v2255_v38 = vld [vmem:[#allocation43_spill] sm:$0xff] }
 0x2c0   : > { %853 = vst [vmem:[%s2003_s27 + $0x20] sm:$0xff] %v821_v40  ;;  %v822_v2 = vsub.f32 %v790_v44, %v2245_v46  ;;  %v1171_v48 = vpop.f32.mrb[12].mxu1 }
 0x2c1   : > { %v1172_v23 = vpop.f32.mrb[13].mxu1 }
 0x2c2   : > { %854 = vst [vmem:[%s2003_s27 + $0x28] sm:$0xff] %v822_v2  ;;  %v1173_v24 = vadd.f32 %v1172_v23, %v1171_v48  ;;  %v1174_v43 = vpop.f32.mrb[14].mxu1 }
 0x2c3   : > { %v1175_v36 = vpop.f32.mrb[15].mxu1 }
 0x2c4   : > { %v791_v12 = vmul.f32 %v1173_v24, %v1996_v35  ;;  %v1176_v17 = vadd.f32 %v1175_v36, %v1174_v43  ;;  %v2256_v36 = vld [vmem:[#allocation12_spill] sm:$0xff] }
 0x2c6   : > { %v823_v5 = vsub.f32 %v791_v12, %v2246_v1  ;;  %v792_v22 = vmul.f32 %v1176_v17, %v1996_v35  ;;  %v2257_v1 = vld [vmem:[#allocation13_spill] sm:$0xff] }
 0x2c8   : > { %855 = vst [vmem:[%s2003_s27 + $0x30] sm:$0xff] %v823_v5  ;;  %v824_v37 = vsub.f32 %v792_v22, %v2247_v27  ;;  %v1177_v42 = vpop.f32.mrb[16].mxu1 }
 0x2c9   : > { %v1178_v21 = vpop.f32.mrb[17].mxu1 }
 0x2ca   : > { %856 = vst [vmem:[%s2003_s27 + $0x38] sm:$0xff] %v824_v37  ;;  %v1179_v16 = vadd.f32 %v1178_v21, %v1177_v42  ;;  %v1180_v30 = vpop.f32.mrb[18].mxu1 }
 0x2cb   : > { %v1181_v15 = vpop.f32.mrb[19].mxu1 }
 0x2cc   : > { %v793_v10 = vmul.f32 %v1179_v16, %v1996_v35  ;;  %v1182_v31 = vadd.f32 %v1181_v15, %v1180_v30  ;;  %v2258_v15 = vld [vmem:[#allocation16_spill] sm:$0xff] }
 0x2ce   : > { %v825_v18 = vsub.f32 %v793_v10, %v2248_v47  ;;  %v794_v0 = vmul.f32 %v1182_v31, %v1996_v35  ;;  %v2259_v47 = vld [vmem:[#allocation17_spill] sm:$0xff] }
 0x2d0   : > { %857 = vst [vmem:[%s2003_s27 + $0x40] sm:$0xff] %v825_v18  ;;  %v826_v9 = vsub.f32 %v794_v0, %v2249_v6  ;;  %v1183_v4 = vpop.f32.mrb[20].mxu1 }
 0x2d1   : > { %v1184_v11 = vpop.f32.mrb[21].mxu1 }
 0x2d2   : > { %858 = vst [vmem:[%s2003_s27 + $0x48] sm:$0xff] %v826_v9  ;;  %v1185_v41 = vadd.f32 %v1184_v11, %v1183_v4  ;;  %v1186_v29 = vpop.f32.mrb[22].mxu1 }
 0x2d3   : > { %v1187_v33 = vpop.f32.mrb[23].mxu1 }
 0x2d4   : > { %v795_v39 = vmul.f32 %v1185_v41, %v1996_v35  ;;  %v1188_v45 = vadd.f32 %v1187_v33, %v1186_v29  ;;  %v2260_v33 = vld [vmem:[#allocation20_spill] sm:$0xff] }
 0x2d6   : > { %v827_v50 = vsub.f32 %v795_v39, %v2250_v49  ;;  %v796_v51 = vmul.f32 %v1188_v45, %v1996_v35  ;;  %v2261_v49 = vld [vmem:[#allocation21_spill] sm:$0xff] }
 0x2d8   : > { %859 = vst [vmem:[%s2003_s27 + $0x50] sm:$0xff] %v827_v50  ;;  %v828_v53 = vsub.f32 %v796_v51, %v2251_v52  ;;  %v1189_v54 = vpop.f32.mrb[24].mxu1 }
 0x2d9   : > { %v1190_v55 = vpop.f32.mrb[25].mxu1 }
 0x2da   : > { %860 = vst [vmem:[%s2003_s27 + $0x58] sm:$0xff] %v828_v53  ;;  %v1191_v56 = vadd.f32 %v1190_v55, %v1189_v54  ;;  %v1192_v57 = vpop.f32.mrb[26].mxu1 }
 0x2db   : > { %v1193_v58 = vpop.f32.mrb[27].mxu1 }
 0x2dc   : > { %v797_v59 = vmul.f32 %v1191_v56, %v1996_v35  ;;  %v1194_v60 = vadd.f32 %v1193_v58, %v1192_v57  ;;  %v2262_v58 = vld [vmem:[#allocation24_spill] sm:$0xff] }
 0x2de   : > { %v829_v62 = vsub.f32 %v797_v59, %v2252_v61  ;;  %v798_v63 = vmul.f32 %v1194_v60, %v1996_v35  ;;  %v2263_v61 = vld [vmem:[#allocation25_spill] sm:$0xff] }
 0x2e0   : > { %861 = vst [vmem:[%s2003_s27 + $0x60] sm:$0xff] %v829_v62  ;;  %v830_v7 = vsub.f32 %v798_v63, %v2253_v3  ;;  %v1195_v8 = vpop.f32.mrb[28].mxu1 }
 0x2e1   : > { %v1196_v13 = vpop.f32.mrb[29].mxu1 }
 0x2e2   : > { %862 = vst [vmem:[%s2003_s27 + $0x68] sm:$0xff] %v830_v7  ;;  %v1197_v14 = vadd.f32 %v1196_v13, %v1195_v8  ;;  %v1198_v19 = vpop.f32.mrb[30].mxu1 }
 0x2e3   : > { %v1199_v20 = vpop.f32.mrb[31].mxu1 }
 0x2e4   : > { %v799_v25 = vmul.f32 %v1197_v14, %v1996_v35  ;;  %v1200_v26 = vadd.f32 %v1199_v20, %v1198_v19  ;;  %v2264_v20 = vld [vmem:[#allocation28_spill] sm:$0xff] }
 0x2e6   : > { %v831_v32 = vsub.f32 %v799_v25, %v2254_v28  ;;  %v800_v34 = vmul.f32 %v1200_v26, %v1996_v35  ;;  %v2265_v28 = vld [vmem:[#allocation29_spill] sm:$0xff] }
 0x2e8   : > { %863 = vst [vmem:[%s2003_s27 + $0x70] sm:$0xff] %v831_v32  ;;  %v832_v40 = vsub.f32 %v800_v34, %v2255_v38  ;;  %v1201_v44 = vpop.f32.mrb[32].mxu1 }
 0x2e9   : > { %v1202_v46 = vpop.f32.mrb[33].mxu1 }
 0x2ea   : > { %864 = vst [vmem:[%s2003_s27 + $0x78] sm:$0xff] %v832_v40  ;;  %v1203_v2 = vadd.f32 %v1202_v46, %v1201_v44  ;;  %v1204_v48 = vpop.f32.mrb[34].mxu1 }
 0x2eb   : > { %v1205_v23 = vpop.f32.mrb[35].mxu1 }
 0x2ec   : > { %v801_v24 = vmul.f32 %v1203_v2, %v1996_v35  ;;  %v1206_v43 = vadd.f32 %v1205_v23, %v1204_v48  ;;  %v2266_v23 = vld [vmem:[#allocation32_spill] sm:$0xff] }
 0x2ee   : > { %v833_v12 = vsub.f32 %v801_v24, %v2256_v36  ;;  %v802_v17 = vmul.f32 %v1206_v43, %v1996_v35  ;;  %v2267_v36 = vld [vmem:[#allocation33_spill] sm:$0xff] }
 0x2f0   : > { %865 = vst [vmem:[%s2003_s27 + $0x80] sm:$0xff] %v833_v12  ;;  %v834_v5 = vsub.f32 %v802_v17, %v2257_v1  ;;  %v1207_v22 = vpop.f32.mrb[36].mxu1 }
 0x2f1   : > { %v1208_v27 = vpop.f32.mrb[37].mxu1 }
 0x2f2   : > { %866 = vst [vmem:[%s2003_s27 + $0x88] sm:$0xff] %v834_v5  ;;  %v1209_v37 = vadd.f32 %v1208_v27, %v1207_v22  ;;  %v1210_v42 = vpop.f32.mrb[38].mxu1 }
 0x2f3   : > { %v1211_v21 = vpop.f32.mrb[39].mxu1 }
 0x2f4   : > { %v803_v16 = vmul.f32 %v1209_v37, %v1996_v35  ;;  %v1212_v30 = vadd.f32 %v1211_v21, %v1210_v42  ;;  %v2268_v21 = vld [vmem:[#allocation36_spill] sm:$0xff] }
 0x2f6   : > { %v835_v10 = vsub.f32 %v803_v16, %v2258_v15  ;;  %v804_v31 = vmul.f32 %v1212_v30, %v1996_v35  ;;  %v2269_v15 = vld [vmem:[#allocation37_spill] sm:$0xff] }
 0x2f8   : > { %867 = vst [vmem:[%s2003_s27 + $0x90] sm:$0xff] %v835_v10  ;;  %v836_v18 = vsub.f32 %v804_v31, %v2259_v47  ;;  %v1213_v0 = vpop.f32.mrb[40].mxu1 }
 0x2f9   : > { %v1214_v6 = vpop.f32.mrb[41].mxu1 }
 0x2fa   : > { %868 = vst [vmem:[%s2003_s27 + $0x98] sm:$0xff] %v836_v18  ;;  %v1215_v9 = vadd.f32 %v1214_v6, %v1213_v0  ;;  %v1216_v4 = vpop.f32.mrb[42].mxu1 }
 0x2fb   : > { %v1217_v11 = vpop.f32.mrb[43].mxu1 }
 0x2fc   : > { %v805_v41 = vmul.f32 %v1215_v9, %v1996_v35  ;;  %v1218_v29 = vadd.f32 %v1217_v11, %v1216_v4  ;;  %v2270_v11 = vld [vmem:[#allocation40_spill] sm:$0xff] }
 0x2fe   : > { %v837_v39 = vsub.f32 %v805_v41, %v2260_v33  ;;  %v806_v45 = vmul.f32 %v1218_v29, %v1996_v35  ;;  %v2271_v33 = vld [vmem:[#allocation41_spill] sm:$0xff] }
 0x300   : > { %869 = vst [vmem:[%s2003_s27 + $0xa0] sm:$0xff] %v837_v39  ;;  %v838_v50 = vsub.f32 %v806_v45, %v2261_v49  ;;  %v1219_v51 = vpop.f32.mrb[44].mxu1 }
 0x301   : > { %v1220_v52 = vpop.f32.mrb[45].mxu1 }
 0x302   : > { %870 = vst [vmem:[%s2003_s27 + $0xa8] sm:$0xff] %v838_v50  ;;  %v1221_v53 = vadd.f32 %v1220_v52, %v1219_v51  ;;  %v1222_v54 = vpop.f32.mrb[46].mxu1 }
 0x303   : > { %v1223_v55 = vpop.f32.mrb[47].mxu1 }
 0x304   : > { %v807_v56 = vmul.f32 %v1221_v53, %v1996_v35  ;;  %v1224_v57 = vadd.f32 %v1223_v55, %v1222_v54 }
 0x306   : > { %v839_v59 = vsub.f32 %v807_v56, %v2262_v58  ;;  %v808_v60 = vmul.f32 %v1224_v57, %v1996_v35 }
 0x308   : > { %871 = vst [vmem:[%s2003_s27 + $0xb0] sm:$0xff] %v839_v59  ;;  %v840_v62 = vsub.f32 %v808_v60, %v2263_v61  ;;  %v1225_v63 = vpop.f32.mrb[48].mxu1 }
 0x309   : > { %v1226_v3 = vpop.f32.mrb[49].mxu1 }
 0x30a   : > { %872 = vst [vmem:[%s2003_s27 + $0xb8] sm:$0xff] %v840_v62  ;;  %v1227_v7 = vadd.f32 %v1226_v3, %v1225_v63  ;;  %v1228_v8 = vpop.f32.mrb[50].mxu1 }
 0x30b   : > { %v1229_v13 = vpop.f32.mrb[51].mxu1 }
 0x30c   : > { %v809_v14 = vmul.f32 %v1227_v7, %v1996_v35  ;;  %v1230_v19 = vadd.f32 %v1229_v13, %v1228_v8 }
 0x30e   : > { %v841_v25 = vsub.f32 %v809_v14, %v2264_v20  ;;  %v810_v26 = vmul.f32 %v1230_v19, %v1996_v35 }
 0x310   : > { %873 = vst [vmem:[%s2003_s27 + $0xc0] sm:$0xff] %v841_v25  ;;  %v842_v32 = vsub.f32 %v810_v26, %v2265_v28  ;;  %v1231_v34 = vpop.f32.mrb[52].mxu1 }
 0x311   : > { %v1232_v38 = vpop.f32.mrb[53].mxu1 }
 0x312   : > { %874 = vst [vmem:[%s2003_s27 + $0xc8] sm:$0xff] %v842_v32  ;;  %v1233_v40 = vadd.f32 %v1232_v38, %v1231_v34  ;;  %v1234_v44 = vpop.f32.mrb[54].mxu1 }
 0x313   : > { %v1235_v46 = vpop.f32.mrb[55].mxu1 }
 0x314   : > { %v811_v2 = vmul.f32 %v1233_v40, %v1996_v35  ;;  %v1236_v48 = vadd.f32 %v1235_v46, %v1234_v44 }
 0x316   : > { %v843_v24 = vsub.f32 %v811_v2, %v2266_v23  ;;  %v812_v43 = vmul.f32 %v1236_v48, %v1996_v35 }
 0x318   : > { %875 = vst [vmem:[%s2003_s27 + $0xd0] sm:$0xff] %v843_v24  ;;  %v844_v12 = vsub.f32 %v812_v43, %v2267_v36  ;;  %v1237_v17 = vpop.f32.mrb[56].mxu1 }
 0x319   : > { %v1238_v1 = vpop.f32.mrb[57].mxu1 }
 0x31a   : > { %876 = vst [vmem:[%s2003_s27 + $0xd8] sm:$0xff] %v844_v12  ;;  %v1239_v5 = vadd.f32 %v1238_v1, %v1237_v17  ;;  %v1240_v22 = vpop.f32.mrb[58].mxu1 }
 0x31b   : > { %v1241_v27 = vpop.f32.mrb[59].mxu1 }
 0x31c   : > { %v813_v37 = vmul.f32 %v1239_v5, %v1996_v35  ;;  %v1242_v42 = vadd.f32 %v1241_v27, %v1240_v22 }
 0x31e   : > { %v845_v16 = vsub.f32 %v813_v37, %v2268_v21  ;;  %v814_v30 = vmul.f32 %v1242_v42, %v1996_v35 }
 0x320   : > { %877 = vst [vmem:[%s2003_s27 + $0xe0] sm:$0xff] %v845_v16  ;;  %v846_v10 = vsub.f32 %v814_v30, %v2269_v15  ;;  %v1243_v31 = vpop.f32.mrb[60].mxu1 }
 0x321   : > { %v1244_v47 = vpop.f32.mrb[61].mxu1 }
 0x322   : > { %878 = vst [vmem:[%s2003_s27 + $0xe8] sm:$0xff] %v846_v10  ;;  %v1245_v18 = vadd.f32 %v1244_v47, %v1243_v31  ;;  %v1246_v0 = vpop.f32.mrb[62].mxu1 }
 0x323   : > { %v1247_v6 = vpop.f32.mrb[63].mxu1 }
 0x324   : > { %v815_v9 = vmul.f32 %v1245_v18, %v1996_v35  ;;  %v1248_v4 = vadd.f32 %v1247_v6, %v1246_v0 }
 0x326   : > { %v847_v41 = vsub.f32 %v815_v9, %v2270_v11  ;;  %v816_v29 = vmul.f32 %v1248_v4, %v1996_v35 }
 0x328   : > { %879 = vst [vmem:[%s2003_s27 + $0xf0] sm:$0xff] %v847_v41  ;;  %v848_v39 = vsub.f32 %v816_v29, %v2271_v33 }
 0x32a   : > { %880 = vst [vmem:[%s2003_s27 + $0xf8] sm:$0xff] %v848_v39 }
 0x32b   : > { %1431 = shalt.err (!%p1428_p11)
}
 0x32c   : > { %s1432_s5 = scalar_lea.hbm %s2100_s12, 4096  ;;  %s1436_s29 = scalar_lea.hbm %s2152_s3, 8192 }
 0x32d   : > { %p1433_p13 = scmp.ne.s32.totalorder %s2100_s12, %s1432_s5  ;;  %p1437_p12 = scmp.lt.u32.totalorder %s2100_s12, %s2152_s3 }
 0x32e   : > { %p1438_p7 = scmp.lt.u32.totalorder %s1436_s29, %s1432_s5  ;;  %p1440_p8 = scmp.lt.u32.totalorder %s1432_s5, %s2100_s12 }
 0x32f   : > { %p1434_p2 = pnand %p1433_p13, %p2272_p9 }
 0x330   : > { %p1439_p3 = por %p1438_p7, %p1437_p12 }
 0x331   : > { %p1435_p6 = pneg %p1434_p2 }
 0x332   : > { %p1441_p10 = por %p1440_p8, %p1439_p3 }
 0x334   : > { %p1442_p1 = pnand %p1441_p10, %p1435_p6 }
 0x336   : > { %1445 = shalt.err (!%p1442_p1)
}
 0x337   : > { %s1496_s13 = smov 128   ;;  %s1497_s24 = smov 256  }
 0x338   : > { %s1498_s27 = smov 8  }
 0x339   : > { %1255 = dma.vmem_to_hbm [thread:$0]  (%p2272_p9), %s2102_s30, 4096, %s2100_s12, %s882_s0, %s1496_s13, %s1497_s24, %s1498_s27  }
 0x33a PF: > { %s909_s18 = sand.u32 1, %s1476_s14   ;;  %p2273_p4 = scmp.ne.s32.totalorder %s2192_s26, 0 }
 0x33b   : > { %p2274_p0 = scmp.ge.s32.totalorder %s1488_s17, 2  ;;  %s910_s23 = scalar_lea.sflag [#allocation5], %s909_s18 }
 0x33d   : > { %p1266_p5 = pnand %p2274_p0, %p2273_p4 }
 0x33f   : > { %1471 = dma.done.wait (!%p1266_p5), %s910_s23, 4096  }
 0x340   : > { %1473 = vsyncadd (!%p1266_p5), %s910_s23, 4294963200  ;;  %p18_p11 = scmp.ge.s32.totalorder %s1547_s19, 4   ;;  %s2275_s14 = smov %s1480_s15 }
 0x341   : > { %s2276_s15 = smov %s1484_s16  ;;  %s2277_s16 = smov %s1559_s22 }
 0x342   : > { %s2278_s17 = smov %s1547_s19  ;;  %20 = sbr.rel (!%p18_p11) target bundleno = 8 (0x8), region = 82 }
 0x349   :  { %915 = vsyncpa [#allocation4], 1 }
 0x34a   :  { %917 = vsyncpa [#allocation4 + $0x1], 1 }
 0x34b   :  { %918 = vsyncpa [#allocation7], 1 }
 0x34c   :  { %920 = vsyncpa [#allocation7 + $0x1], 1 }
 0x34d   :  { %921 = vsyncpa [#allocation5], 1 }
 0x34e   :  { %923 = vsyncpa [#allocation5 + $0x1], 1 }

</bundles_post_ra>
